<compile_context>
chip_gen: v5e
topology: v5e:2x2
jax: 0.10.0
libtpu: 0.0.40
codegen_flags: <defaults>
</compile_context>

<pallas_src>
import functools
import math

import jax
import jax.numpy as jnp
from jax import lax
from jax.experimental import pallas as pl
from jax.experimental.pallas import tpu as pltpu

# Small demo dimensions (consistent with the module's forward).
B, S, H, NH, I, V = 2, 8, 32, 4, 64, 100
DH = H // NH
MAXPOS = 16
LN_EPS = 1e-12


def _layer_norm(h, g, b):
    mu = jnp.mean(h, axis=-1, keepdims=True)
    var = jnp.mean((h - mu) ** 2, axis=-1, keepdims=True)
    return (h - mu) * lax.rsqrt(var + LN_EPS) * g + b


def _qa_kernel(*refs, compute_loss: bool):
    """One grid step = one batch element: encoder layer -> QA head [-> QA loss terms]."""
    if compute_loss:
        sp_ref, ep_ref = refs[:2]
        refs = refs[2:]
    (x_ref, kbias_ref, vec_ref, qkvwb_ref, wo_ref,
     w1b1_ref, w2_ref, whT_ref) = refs[:8]
    if compute_loss:
        logits_ref, unpooled_ref, lt_ref, ctx_ref = refs[8:]
    else:
        logits_ref, unpooled_ref, ctx_ref = refs[8:]

    x = x_ref[...]                       # (S, H)  this batch's embeddings
    kbias = kbias_ref[0]                 # (1, S)  additive key-mask bias (0 / -1e4)

    vecs = vec_ref[...]                  # (8, H)  packed row-vector params
    ln_e_g, ln_e_b = vecs[0:1, :], vecs[1:2, :]
    bo = vecs[2:3, :]
    ln1_g, ln1_b = vecs[3:4, :], vecs[4:5, :]
    b2 = vecs[5:6, :]
    ln2_g, ln2_b = vecs[6:7, :], vecs[7:8, :]

    # Embedding LayerNorm.
    x = _layer_norm(x, ln_e_g, ln_e_b)

    # --- Multi-head self-attention ---
    # Single lane-dense QKV projection: (S, H) x (H, 3H).
    qkvwb = qkvwb_ref[...]                                                     # (H+1, 3H)
    qkv = (jnp.dot(x, qkvwb[0:H, :], preferred_element_type=jnp.float32)
           + qkvwb[H:H + 1, :])                                                # (S, 3H)

    scale = 1.0 / math.sqrt(DH)
    # Per-head attention on this batch's (S, S) scores; a batched dot_general
    # would lower to the same per-head MXU matmuls.  No replicated activations,
    # no (NH, S, H) intermediate.
    # TODO(synk): at real sizes make the head dim a grid axis (flash style).
    for h in range(NH):
        qh = qkv[:, h * DH:(h + 1) * DH]                                       # (S, DH)
        kh = qkv[:, H + h * DH:H + (h + 1) * DH]
        vh = qkv[:, 2 * H + h * DH:2 * H + (h + 1) * DH]
        sc = lax.dot_general(qh, kh, (((1,), (1,)), ((), ())),
                             preferred_element_type=jnp.float32) * scale + kbias  # (S, S)
        sc = sc - jnp.max(sc, axis=-1, keepdims=True)
        p = jnp.exp(sc)
        p = p / jnp.sum(p, axis=-1, keepdims=True)        # exact normalisation (parity)
        ctx_ref[:, h * DH:(h + 1) * DH] = jnp.dot(p, vh,
                                                  preferred_element_type=jnp.float32)

    # Fused output projection: one (S, H) x (H, H) matmul over all heads.
    attn_out = jnp.dot(ctx_ref[...], wo_ref[...],
                       preferred_element_type=jnp.float32) + bo
    x1 = _layer_norm(x + attn_out, ln1_g, ln1_b)

    # --- Feed-forward ---
    w1b1 = w1b1_ref[...]                                                       # (H+1, I)
    hdn = (jnp.dot(x1, w1b1[0:H, :], preferred_element_type=jnp.float32)
           + w1b1[H:H + 1, :])
    # TODO(synk): BERT's reference GELU is the exact erf form; tanh variant kept here.
    hdn = jax.nn.gelu(hdn, approximate=True)
    ffn = jnp.dot(hdn, w2_ref[...], preferred_element_type=jnp.float32) + b2
    x2 = _layer_norm(x1 + ffn, ln2_g, ln2_b)

    unpooled_ref[...] = x2                                                     # (S, H)

    # --- QAHead: Linear(H, 2), emitted directly in (2, S) layout ---
    whT = whT_ref[...]                                                         # (2, H+1)
    lg = lax.dot_general(whT[:, 0:H], x2, (((1,), (1,)), ((), ())),
                         preferred_element_type=jnp.float32) + whT[:, H:H + 1]  # (2, S)
    logits_ref[0] = lg

    if not compute_loss:
        return

    # --- compute_qa_loss (per-batch terms): CE numerators + valid flags ---
    b_id = pl.program_id(0)
    sp = jnp.clip(sp_ref[b_id], 0, S)            # clamp_(0, ignored_index)
    ep = jnp.clip(ep_ref[b_id], 0, S)
    vs = (sp != S).astype(jnp.float32)
    ve = (ep != S).astype(jnp.float32)
    iota_s = lax.broadcasted_iota(jnp.int32, (1, S), 1)
    m = jnp.max(lg, axis=-1, keepdims=True)                                    # (2, 1)
    lse = m + jnp.log(jnp.sum(jnp.exp(lg - m), axis=-1, keepdims=True))        # (2, 1)
    pick_s = jnp.sum(jnp.where(iota_s == sp, lg[0:1, :], 0.0), axis=-1, keepdims=True)
    pick_e = jnp.sum(jnp.where(iota_s == ep, lg[1:2, :], 0.0), axis=-1, keepdims=True)
    s_term = (lse[0:1, :] - pick_s) * vs                                       # (1, 1)
    e_term = (lse[1:2, :] - pick_e) * ve
    idx4 = lax.broadcasted_iota(jnp.int32, (1, 4), 1)
    lt_ref[0] = (jnp.where(idx4 == 0, s_term, 0.0)
                 + jnp.where(idx4 == 1, e_term, 0.0)
                 + jnp.where(idx4 == 2, vs, 0.0)
                 + jnp.where(idx4 == 3, ve, 0.0))                              # (1, 4)


_PACK_VEC_ORDER = ("ln_e_g", "ln_e_b", "bo", "ln1_g", "ln1_b", "b2", "ln2_g", "ln2_b")


def _pack_params(p):
    """Pack the ~20 parameter arrays into 6 dense kernel inputs (fewer DMAs)."""
    qkvwb = jnp.concatenate(
        [jnp.concatenate([p["wq"], p["wk"], p["wv"]], axis=1),
         jnp.concatenate([p["bq"], p["bk"], p["bv"]], axis=1)], axis=0)        # (H+1, 3H)
    vecs = jnp.concatenate([p[n] for n in _PACK_VEC_ORDER], axis=0)            # (8, H)
    w1b1 = jnp.concatenate([p["w1"], p["b1"]], axis=0)                         # (H+1, I)
    whT = jnp.concatenate([p["wh"].T, p["bh"].reshape(2, 1)], axis=1)          # (2, H+1)
    return vecs, qkvwb, p["wo"], w1b1, p["w2"], whT


def _full_spec(a):
    """Whole-array (un-tiled) VMEM-resident weight: same block every grid step."""
    zeros = (0,) * a.ndim
    return pl.BlockSpec(a.shape, lambda i, *_: zeros)


@functools.partial(jax.jit, static_argnames=("compute_loss",))
def qa_model_forward(params, input_ids, segment_ids, input_mask,
                     start_positions=None, end_positions=None,
                     compute_loss=False):
    b, s = input_ids.shape
    # TODO(synk): the embedding-table gather stays in plain JAX (data-dependent
    # gather has no clean BlockSpec form at this scale).
    x = (params["word_emb"][input_ids]
         + params["seg_emb"][segment_ids]
         + params["pos_emb"][None, :s, :]).astype(jnp.float32).reshape(b * s, H)

    # O(B*S) additive key bias (0 for valid tokens, -1e4 for masked), built once
    # in the wrapper.  -1e4 (BERT convention) underflows to exactly 0 after exp.
    key_bias = jnp.where(input_mask > 0, 0.0, -1e4).astype(jnp.float32).reshape(b, 1, s)

    packed = _pack_params(params)

    inputs = [x, key_bias, *packed]
    in_specs = [pl.BlockSpec((s, H), lambda i, *_: (i, 0)),
                pl.BlockSpec((1, 1, s), lambda i, *_: (i, 0, 0))]
    in_specs += [_full_spec(a) for a in packed]

    out_shape = [jax.ShapeDtypeStruct((b, 2, s), jnp.float32),
                 jax.ShapeDtypeStruct((b * s, H), jnp.float32)]
    out_specs = [pl.BlockSpec((1, 2, s), lambda i, *_: (i, 0, 0)),
                 pl.BlockSpec((s, H), lambda i, *_: (i, 0))]

    num_prefetch = 0
    if compute_loss:
        sp = start_positions.reshape(b).astype(jnp.int32)
        ep = end_positions.reshape(b).astype(jnp.int32)
        inputs = [sp, ep] + inputs
        num_prefetch = 2
        out_shape.append(jax.ShapeDtypeStruct((b, 1, 4), jnp.float32))
        out_specs.append(pl.BlockSpec((1, 1, 4), lambda i, *_: (i, 0, 0)))

    grid_spec = pltpu.PrefetchScalarGridSpec(
        num_scalar_prefetch=num_prefetch,
        grid=(b,),
        in_specs=in_specs,
        out_specs=tuple(out_specs),
        scratch_shapes=[pltpu.VMEM((s, H), jnp.float32)])   # per-batch ctx slab

    outs = pl.pallas_call(
        functools.partial(_qa_kernel, compute_loss=compute_loss),
        grid_spec=grid_spec,
        out_shape=tuple(out_shape),
        compiler_params=pltpu.CompilerParams(
            dimension_semantics=("parallel",),
            # Trivial at demo size; re-derive per generation at real sizes
            # (v7x has only 64 MiB physical VMEM).
            vmem_limit_bytes=32 * 1024 * 1024),
    )(*inputs)

    logits = outs[0]                           # (B, 2, S), already permuted layout
    unpooled = outs[1].reshape(b, s, H)        # leading-dim reshape: free metadata op
    if compute_loss:
        terms = outs[2].reshape(b, 4)
        # torch CrossEntropyLoss 'mean' over non-ignored targets (NaN if every
        # target equals the ignore index, matching PyTorch).
        start_loss = jnp.sum(terms[:, 0]) / jnp.sum(terms[:, 2])
        end_loss = jnp.sum(terms[:, 1]) / jnp.sum(terms[:, 3])
        loss = 0.5 * (start_loss + end_loss)
        return logits, unpooled, loss
    return logits, unpooled


def init_params(key):
    ks = jax.random.split(key, 10)
    w = lambda k, shape: (0.02 * jax.random.normal(k, shape)).astype(jnp.float32)
    return {
        "word_emb": w(ks[0], (V, H)),
        "seg_emb": w(ks[1], (2, H)),
        "pos_emb": w(ks[2], (MAXPOS, H)),
        "ln_e_g": jnp.ones((1, H), jnp.float32),
        "ln_e_b": jnp.zeros((1, H), jnp.float32),
        "wq": w(ks[3], (H, H)), "bq": jnp.zeros((1, H), jnp.float32),
        "wk": w(ks[4], (H, H)), "bk": jnp.zeros((1, H), jnp.float32),
        "wv": w(ks[5], (H, H)), "bv": jnp.zeros((1, H), jnp.float32),
        "wo": w(ks[6], (H, H)), "bo": jnp.zeros((1, H), jnp.float32),
        "ln1_g": jnp.ones((1, H), jnp.float32),
        "ln1_b": jnp.zeros((1, H), jnp.float32),
        "w1": w(ks[7], (H, I)), "b1": jnp.zeros((1, I), jnp.float32),
        "w2": w(ks[8], (I, H)), "b2": jnp.zeros((1, H), jnp.float32),
        "ln2_g": jnp.ones((1, H), jnp.float32),
        "ln2_b": jnp.zeros((1, H), jnp.float32),
        "wh": w(ks[9], (H, 2)), "bh": jnp.zeros((1, 2), jnp.float32),
    }


if __name__ == "__main__":
    key = jax.random.PRNGKey(0)
    kp, kid, kseg = jax.random.split(key, 3)
    params = init_params(kp)

    input_ids = jax.random.randint(kid, (B, S), 0, V, dtype=jnp.int32)
    segment_ids = jax.random.randint(kseg, (B, S), 0, 2, dtype=jnp.int32)
    input_mask = jnp.ones((B, S), dtype=jnp.int32)
    start_positions = jnp.array([1, 3], dtype=jnp.int32)
    end_positions = jnp.array([4, 6], dtype=jnp.int32)

    logits, unpooled, loss = qa_model_forward(
        params, input_ids, segment_ids, input_mask,
        start_positions, end_positions, compute_loss=True)
    logits_nl, unpooled_nl = qa_model_forward(
        params, input_ids, segment_ids, input_mask, compute_loss=False)
    jax.block_until_ready((logits, unpooled, loss, logits_nl, unpooled_nl))

    assert logits.shape == (B, 2, S)
    assert unpooled.shape == (B, S, H)
    assert loss.shape == ()
    assert bool(jnp.isfinite(loss))
    assert bool(jnp.allclose(logits, logits_nl, atol=1e-5, rtol=1e-5))
    print("KERNEL_OK")
</pallas_src>

<mosaic_0001>
module attributes {stable_mosaic.version = 11 : i64} {
  func.func @_qa_kernel(%arg0: i32, %arg1: memref<2xi32, #tpu.memory_space<smem>>, %arg2: memref<2xi32, #tpu.memory_space<smem>>, %arg3: memref<8x32xf32, #tpu.memory_space<vmem>>, %arg4: memref<1x1x8xf32, #tpu.memory_space<vmem>>, %arg5: memref<8x32xf32, #tpu.memory_space<vmem>>, %arg6: memref<33x96xf32, #tpu.memory_space<vmem>>, %arg7: memref<32x32xf32, #tpu.memory_space<vmem>>, %arg8: memref<33x64xf32, #tpu.memory_space<vmem>>, %arg9: memref<64x32xf32, #tpu.memory_space<vmem>>, %arg10: memref<2x33xf32, #tpu.memory_space<vmem>>, %arg11: memref<1x2x8xf32, #tpu.memory_space<vmem>>, %arg12: memref<8x32xf32, #tpu.memory_space<vmem>>, %arg13: memref<1x1x4xf32, #tpu.memory_space<vmem>>, %arg14: memref<8x32xf32, #tpu.memory_space<vmem>>) attributes {dimension_semantics = [#tpu.dimension_semantics<parallel>], iteration_bounds = array<i64: 2>, scalar_prefetch = 2 : i64, scratch_operands = 1 : i64, tpu.core_type = #tpu.core_type<tc>, window_params = [{transform_indices = @transform_0, window_bounds = array<i64: 8, 32>}, {transform_indices = @transform_1, window_bounds = array<i64: 1, 1, 8>}, {pipeline_mode = #tpu.pipeline_mode<synchronous>, transform_indices = @transform_2, window_bounds = array<i64: 8, 32>}, {pipeline_mode = #tpu.pipeline_mode<synchronous>, transform_indices = @transform_3, window_bounds = array<i64: 33, 96>}, {pipeline_mode = #tpu.pipeline_mode<synchronous>, transform_indices = @transform_4, window_bounds = array<i64: 32, 32>}, {pipeline_mode = #tpu.pipeline_mode<synchronous>, transform_indices = @transform_5, window_bounds = array<i64: 33, 64>}, {pipeline_mode = #tpu.pipeline_mode<synchronous>, transform_indices = @transform_6, window_bounds = array<i64: 64, 32>}, {pipeline_mode = #tpu.pipeline_mode<synchronous>, transform_indices = @transform_7, window_bounds = array<i64: 2, 33>}, {transform_indices = @transform_8, window_bounds = array<i64: 1, 2, 8>}, {transform_indices = @transform_9, window_bounds = array<i64: 8, 32>}, {transform_indices = @transform_10, window_bounds = array<i64: 1, 1, 4>}]} {
    %c0 = arith.constant 0 : index
    %c0_0 = arith.constant 0 : index
    %0 = vector.load %arg3[%c0, %c0_0] : memref<8x32xf32, #tpu.memory_space<vmem>>, vector<8x32xf32>
    %c0_1 = arith.constant 0 : index
    %c0_2 = arith.constant 0 : index
    %c0_3 = arith.constant 0 : index
    %1 = vector.load %arg4[%c0_1, %c0_2, %c0_3] : memref<1x1x8xf32, #tpu.memory_space<vmem>>, vector<1x1x8xf32>
    %2 = vector.shape_cast %1 : vector<1x1x8xf32> to vector<1x8xf32>
    %c0_4 = arith.constant 0 : index
    %c0_5 = arith.constant 0 : index
    %3 = vector.load %arg5[%c0_4, %c0_5] : memref<8x32xf32, #tpu.memory_space<vmem>>, vector<8x32xf32>
    %4 = vector.extract_strided_slice %3 {offsets = [0, 0], sizes = [1, 32], strides = [1, 1]} : vector<8x32xf32> to vector<1x32xf32>
    %5 = vector.extract_strided_slice %3 {offsets = [1, 0], sizes = [1, 32], strides = [1, 1]} : vector<8x32xf32> to vector<1x32xf32>
    %6 = vector.extract_strided_slice %3 {offsets = [2, 0], sizes = [1, 32], strides = [1, 1]} : vector<8x32xf32> to vector<1x32xf32>
    %7 = vector.extract_strided_slice %3 {offsets = [3, 0], sizes = [1, 32], strides = [1, 1]} : vector<8x32xf32> to vector<1x32xf32>
    %8 = vector.extract_strided_slice %3 {offsets = [4, 0], sizes = [1, 32], strides = [1, 1]} : vector<8x32xf32> to vector<1x32xf32>
    %9 = vector.extract_strided_slice %3 {offsets = [5, 0], sizes = [1, 32], strides = [1, 1]} : vector<8x32xf32> to vector<1x32xf32>
    %10 = vector.extract_strided_slice %3 {offsets = [6, 0], sizes = [1, 32], strides = [1, 1]} : vector<8x32xf32> to vector<1x32xf32>
    %11 = vector.extract_strided_slice %3 {offsets = [7, 0], sizes = [1, 32], strides = [1, 1]} : vector<8x32xf32> to vector<1x32xf32>
    %cst = arith.constant dense<0.000000e+00> : vector<8xf32>
    %12 = vector.multi_reduction <add>, %0, %cst [1] : vector<8x32xf32> to vector<8xf32>
    %13 = vector.shape_cast %12 : vector<8xf32> to vector<8x1xf32>
    %cst_6 = arith.constant 3.200000e+01 : f32
    %14 = vector.broadcast %cst_6 : f32 to vector<8x1xf32>
    %15 = arith.divf %13, %14 : vector<8x1xf32>
    %16 = vector.broadcast %15 : vector<8x1xf32> to vector<8x32xf32>
    %17 = arith.subf %0, %16 : vector<8x32xf32>
    %18 = arith.mulf %17, %17 : vector<8x32xf32>
    %cst_7 = arith.constant dense<0.000000e+00> : vector<8xf32>
    %19 = vector.multi_reduction <add>, %18, %cst_7 [1] : vector<8x32xf32> to vector<8xf32>
    %20 = vector.shape_cast %19 : vector<8xf32> to vector<8x1xf32>
    %cst_8 = arith.constant 3.200000e+01 : f32
    %21 = vector.broadcast %cst_8 : f32 to vector<8x1xf32>
    %22 = arith.divf %20, %21 : vector<8x1xf32>
    %23 = vector.broadcast %15 : vector<8x1xf32> to vector<8x32xf32>
    %24 = arith.subf %0, %23 : vector<8x32xf32>
    %cst_9 = arith.constant 9.99999996E-13 : f32
    %25 = vector.broadcast %cst_9 : f32 to vector<8x1xf32>
    %26 = arith.addf %22, %25 : vector<8x1xf32>
    %27 = math.rsqrt %26 : vector<8x1xf32>
    %28 = vector.broadcast %27 : vector<8x1xf32> to vector<8x32xf32>
    %29 = arith.mulf %24, %28 : vector<8x32xf32>
    %30 = vector.broadcast %4 : vector<1x32xf32> to vector<8x32xf32>
    %31 = arith.mulf %29, %30 : vector<8x32xf32>
    %32 = vector.broadcast %5 : vector<1x32xf32> to vector<8x32xf32>
    %33 = arith.addf %31, %32 : vector<8x32xf32>
    %c0_10 = arith.constant 0 : index
    %c0_11 = arith.constant 0 : index
    %34 = vector.load %arg6[%c0_10, %c0_11] : memref<33x96xf32, #tpu.memory_space<vmem>>, vector<33x96xf32>
    %35 = vector.extract_strided_slice %34 {offsets = [0, 0], sizes = [32, 96], strides = [1, 1]} : vector<33x96xf32> to vector<32x96xf32>
    %cst_12 = arith.constant dense<0.000000e+00> : vector<8x96xf32>
    %36 = tpu.matmul %33, %35, %cst_12 {dimension_numbers = #tpu.dot_dimension_numbers<[1], [0], [0], [1], [0, 0, 1, 1], [], []>} : vector<8x32xf32>, vector<32x96xf32>, vector<8x96xf32> -> vector<8x96xf32>
    %37 = vector.extract_strided_slice %34 {offsets = [32, 0], sizes = [1, 96], strides = [1, 1]} : vector<33x96xf32> to vector<1x96xf32>
    %38 = vector.broadcast %37 : vector<1x96xf32> to vector<8x96xf32>
    %39 = arith.addf %36, %38 : vector<8x96xf32>
    %40 = vector.extract_strided_slice %39 {offsets = [0, 0], sizes = [8, 8], strides = [1, 1]} : vector<8x96xf32> to vector<8x8xf32>
    %41 = vector.extract_strided_slice %39 {offsets = [0, 32], sizes = [8, 8], strides = [1, 1]} : vector<8x96xf32> to vector<8x8xf32>
    %42 = vector.extract_strided_slice %39 {offsets = [0, 64], sizes = [8, 8], strides = [1, 1]} : vector<8x96xf32> to vector<8x8xf32>
    %cst_13 = arith.constant dense<0.000000e+00> : vector<8x8xf32>
    %43 = tpu.matmul %40, %41, %cst_13 {dimension_numbers = #tpu.dot_dimension_numbers<[1], [1], [0], [0], [0, 0, 1, 0], [], []>} : vector<8x8xf32>, vector<8x8xf32>, vector<8x8xf32> -> vector<8x8xf32>
    %cst_14 = arith.constant 0.353553385 : f32
    %44 = vector.broadcast %cst_14 : f32 to vector<8x8xf32>
    %45 = arith.mulf %43, %44 : vector<8x8xf32>
    %46 = vector.broadcast %2 : vector<1x8xf32> to vector<8x8xf32>
    %47 = arith.addf %45, %46 : vector<8x8xf32>
    %cst_15 = arith.constant dense<0xFF800000> : vector<8xf32>
    %48 = vector.multi_reduction <maximumf>, %47, %cst_15 [1] : vector<8x8xf32> to vector<8xf32>
    %49 = vector.shape_cast %48 : vector<8xf32> to vector<8x1xf32>
    %50 = vector.broadcast %49 : vector<8x1xf32> to vector<8x8xf32>
    %51 = arith.subf %47, %50 : vector<8x8xf32>
    %52 = math.exp %51 : vector<8x8xf32>
    %cst_16 = arith.constant dense<0.000000e+00> : vector<8xf32>
    %53 = vector.multi_reduction <add>, %52, %cst_16 [1] : vector<8x8xf32> to vector<8xf32>
    %54 = vector.shape_cast %53 : vector<8xf32> to vector<8x1xf32>
    %55 = vector.broadcast %54 : vector<8x1xf32> to vector<8x8xf32>
    %56 = arith.divf %52, %55 : vector<8x8xf32>
    %cst_17 = arith.constant dense<0.000000e+00> : vector<8x8xf32>
    %57 = tpu.matmul %56, %42, %cst_17 {dimension_numbers = #tpu.dot_dimension_numbers<[1], [0], [0], [1], [0, 0, 1, 1], [], []>} : vector<8x8xf32>, vector<8x8xf32>, vector<8x8xf32> -> vector<8x8xf32>
    %c0_18 = arith.constant 0 : index
    %c0_19 = arith.constant 0 : index
    %58 = vector.load %arg14[%c0_18, %c0_19] : memref<8x32xf32, #tpu.memory_space<vmem>>, vector<8x8xf32>
    tpu.vector_store %arg14[%c0_18, %c0_19], %57 {strides = array<i32>} : memref<8x32xf32, #tpu.memory_space<vmem>>, vector<8x8xf32>,
    %59 = vector.extract_strided_slice %39 {offsets = [0, 8], sizes = [8, 8], strides = [1, 1]} : vector<8x96xf32> to vector<8x8xf32>
    %60 = vector.extract_strided_slice %39 {offsets = [0, 40], sizes = [8, 8], strides = [1, 1]} : vector<8x96xf32> to vector<8x8xf32>
    %61 = vector.extract_strided_slice %39 {offsets = [0, 72], sizes = [8, 8], strides = [1, 1]} : vector<8x96xf32> to vector<8x8xf32>
    %cst_20 = arith.constant dense<0.000000e+00> : vector<8x8xf32>
    %62 = tpu.matmul %59, %60, %cst_20 {dimension_numbers = #tpu.dot_dimension_numbers<[1], [1], [0], [0], [0, 0, 1, 0], [], []>} : vector<8x8xf32>, vector<8x8xf32>, vector<8x8xf32> -> vector<8x8xf32>
    %cst_21 = arith.constant 0.353553385 : f32
    %63 = vector.broadcast %cst_21 : f32 to vector<8x8xf32>
    %64 = arith.mulf %62, %63 : vector<8x8xf32>
    %65 = vector.broadcast %2 : vector<1x8xf32> to vector<8x8xf32>
    %66 = arith.addf %64, %65 : vector<8x8xf32>
    %cst_22 = arith.constant dense<0xFF800000> : vector<8xf32>
    %67 = vector.multi_reduction <maximumf>, %66, %cst_22 [1] : vector<8x8xf32> to vector<8xf32>
    %68 = vector.shape_cast %67 : vector<8xf32> to vector<8x1xf32>
    %69 = vector.broadcast %68 : vector<8x1xf32> to vector<8x8xf32>
    %70 = arith.subf %66, %69 : vector<8x8xf32>
    %71 = math.exp %70 : vector<8x8xf32>
    %cst_23 = arith.constant dense<0.000000e+00> : vector<8xf32>
    %72 = vector.multi_reduction <add>, %71, %cst_23 [1] : vector<8x8xf32> to vector<8xf32>
    %73 = vector.shape_cast %72 : vector<8xf32> to vector<8x1xf32>
    %74 = vector.broadcast %73 : vector<8x1xf32> to vector<8x8xf32>
    %75 = arith.divf %71, %74 : vector<8x8xf32>
    %cst_24 = arith.constant dense<0.000000e+00> : vector<8x8xf32>
    %76 = tpu.matmul %75, %61, %cst_24 {dimension_numbers = #tpu.dot_dimension_numbers<[1], [0], [0], [1], [0, 0, 1, 1], [], []>} : vector<8x8xf32>, vector<8x8xf32>, vector<8x8xf32> -> vector<8x8xf32>
    %c0_25 = arith.constant 0 : index
    %c8 = arith.constant 8 : index
    %77 = vector.load %arg14[%c0_25, %c8] : memref<8x32xf32, #tpu.memory_space<vmem>>, vector<8x8xf32>
    tpu.vector_store %arg14[%c0_25, %c8], %76 {strides = array<i32>} : memref<8x32xf32, #tpu.memory_space<vmem>>, vector<8x8xf32>,
    %78 = vector.extract_strided_slice %39 {offsets = [0, 16], sizes = [8, 8], strides = [1, 1]} : vector<8x96xf32> to vector<8x8xf32>
    %79 = vector.extract_strided_slice %39 {offsets = [0, 48], sizes = [8, 8], strides = [1, 1]} : vector<8x96xf32> to vector<8x8xf32>
    %80 = vector.extract_strided_slice %39 {offsets = [0, 80], sizes = [8, 8], strides = [1, 1]} : vector<8x96xf32> to vector<8x8xf32>
    %cst_26 = arith.constant dense<0.000000e+00> : vector<8x8xf32>
    %81 = tpu.matmul %78, %79, %cst_26 {dimension_numbers = #tpu.dot_dimension_numbers<[1], [1], [0], [0], [0, 0, 1, 0], [], []>} : vector<8x8xf32>, vector<8x8xf32>, vector<8x8xf32> -> vector<8x8xf32>
    %cst_27 = arith.constant 0.353553385 : f32
    %82 = vector.broadcast %cst_27 : f32 to vector<8x8xf32>
    %83 = arith.mulf %81, %82 : vector<8x8xf32>
    %84 = vector.broadcast %2 : vector<1x8xf32> to vector<8x8xf32>
    %85 = arith.addf %83, %84 : vector<8x8xf32>
    %cst_28 = arith.constant dense<0xFF800000> : vector<8xf32>
    %86 = vector.multi_reduction <maximumf>, %85, %cst_28 [1] : vector<8x8xf32> to vector<8xf32>
    %87 = vector.shape_cast %86 : vector<8xf32> to vector<8x1xf32>
    %88 = vector.broadcast %87 : vector<8x1xf32> to vector<8x8xf32>
    %89 = arith.subf %85, %88 : vector<8x8xf32>
    %90 = math.exp %89 : vector<8x8xf32>
    %cst_29 = arith.constant dense<0.000000e+00> : vector<8xf32>
    %91 = vector.multi_reduction <add>, %90, %cst_29 [1] : vector<8x8xf32> to vector<8xf32>
    %92 = vector.shape_cast %91 : vector<8xf32> to vector<8x1xf32>
    %93 = vector.broadcast %92 : vector<8x1xf32> to vector<8x8xf32>
    %94 = arith.divf %90, %93 : vector<8x8xf32>
    %cst_30 = arith.constant dense<0.000000e+00> : vector<8x8xf32>
    %95 = tpu.matmul %94, %80, %cst_30 {dimension_numbers = #tpu.dot_dimension_numbers<[1], [0], [0], [1], [0, 0, 1, 1], [], []>} : vector<8x8xf32>, vector<8x8xf32>, vector<8x8xf32> -> vector<8x8xf32>
    %c0_31 = arith.constant 0 : index
    %c16 = arith.constant 16 : index
    %96 = vector.load %arg14[%c0_31, %c16] : memref<8x32xf32, #tpu.memory_space<vmem>>, vector<8x8xf32>
    tpu.vector_store %arg14[%c0_31, %c16], %95 {strides = array<i32>} : memref<8x32xf32, #tpu.memory_space<vmem>>, vector<8x8xf32>,
    %97 = vector.extract_strided_slice %39 {offsets = [0, 24], sizes = [8, 8], strides = [1, 1]} : vector<8x96xf32> to vector<8x8xf32>
    %98 = vector.extract_strided_slice %39 {offsets = [0, 56], sizes = [8, 8], strides = [1, 1]} : vector<8x96xf32> to vector<8x8xf32>
    %99 = vector.extract_strided_slice %39 {offsets = [0, 88], sizes = [8, 8], strides = [1, 1]} : vector<8x96xf32> to vector<8x8xf32>
    %cst_32 = arith.constant dense<0.000000e+00> : vector<8x8xf32>
    %100 = tpu.matmul %97, %98, %cst_32 {dimension_numbers = #tpu.dot_dimension_numbers<[1], [1], [0], [0], [0, 0, 1, 0], [], []>} : vector<8x8xf32>, vector<8x8xf32>, vector<8x8xf32> -> vector<8x8xf32>
    %cst_33 = arith.constant 0.353553385 : f32
    %101 = vector.broadcast %cst_33 : f32 to vector<8x8xf32>
    %102 = arith.mulf %100, %101 : vector<8x8xf32>
    %103 = vector.broadcast %2 : vector<1x8xf32> to vector<8x8xf32>
    %104 = arith.addf %102, %103 : vector<8x8xf32>
    %cst_34 = arith.constant dense<0xFF800000> : vector<8xf32>
    %105 = vector.multi_reduction <maximumf>, %104, %cst_34 [1] : vector<8x8xf32> to vector<8xf32>
    %106 = vector.shape_cast %105 : vector<8xf32> to vector<8x1xf32>
    %107 = vector.broadcast %106 : vector<8x1xf32> to vector<8x8xf32>
    %108 = arith.subf %104, %107 : vector<8x8xf32>
    %109 = math.exp %108 : vector<8x8xf32>
    %cst_35 = arith.constant dense<0.000000e+00> : vector<8xf32>
    %110 = vector.multi_reduction <add>, %109, %cst_35 [1] : vector<8x8xf32> to vector<8xf32>
    %111 = vector.shape_cast %110 : vector<8xf32> to vector<8x1xf32>
    %112 = vector.broadcast %111 : vector<8x1xf32> to vector<8x8xf32>
    %113 = arith.divf %109, %112 : vector<8x8xf32>
    %cst_36 = arith.constant dense<0.000000e+00> : vector<8x8xf32>
    %114 = tpu.matmul %113, %99, %cst_36 {dimension_numbers = #tpu.dot_dimension_numbers<[1], [0], [0], [1], [0, 0, 1, 1], [], []>} : vector<8x8xf32>, vector<8x8xf32>, vector<8x8xf32> -> vector<8x8xf32>
    %c0_37 = arith.constant 0 : index
    %c24 = arith.constant 24 : index
    %115 = vector.load %arg14[%c0_37, %c24] : memref<8x32xf32, #tpu.memory_space<vmem>>, vector<8x8xf32>
    tpu.vector_store %arg14[%c0_37, %c24], %114 {strides = array<i32>} : memref<8x32xf32, #tpu.memory_space<vmem>>, vector<8x8xf32>,
    %c0_38 = arith.constant 0 : index
    %c0_39 = arith.constant 0 : index
    %116 = vector.load %arg14[%c0_38, %c0_39] : memref<8x32xf32, #tpu.memory_space<vmem>>, vector<8x32xf32>
    %c0_40 = arith.constant 0 : index
    %c0_41 = arith.constant 0 : index
    %117 = vector.load %arg7[%c0_40, %c0_41] : memref<32x32xf32, #tpu.memory_space<vmem>>, vector<32x32xf32>
    %cst_42 = arith.constant dense<0.000000e+00> : vector<8x32xf32>
    %118 = tpu.matmul %116, %117, %cst_42 {dimension_numbers = #tpu.dot_dimension_numbers<[1], [0], [0], [1], [0, 0, 1, 1], [], []>} : vector<8x32xf32>, vector<32x32xf32>, vector<8x32xf32> -> vector<8x32xf32>
    %119 = vector.broadcast %6 : vector<1x32xf32> to vector<8x32xf32>
    %120 = arith.addf %118, %119 : vector<8x32xf32>
    %121 = arith.addf %33, %120 : vector<8x32xf32>
    %cst_43 = arith.constant dense<0.000000e+00> : vector<8xf32>
    %122 = vector.multi_reduction <add>, %121, %cst_43 [1] : vector<8x32xf32> to vector<8xf32>
    %123 = vector.shape_cast %122 : vector<8xf32> to vector<8x1xf32>
    %cst_44 = arith.constant 3.200000e+01 : f32
    %124 = vector.broadcast %cst_44 : f32 to vector<8x1xf32>
    %125 = arith.divf %123, %124 : vector<8x1xf32>
    %126 = vector.broadcast %125 : vector<8x1xf32> to vector<8x32xf32>
    %127 = arith.subf %121, %126 : vector<8x32xf32>
    %128 = arith.mulf %127, %127 : vector<8x32xf32>
    %cst_45 = arith.constant dense<0.000000e+00> : vector<8xf32>
    %129 = vector.multi_reduction <add>, %128, %cst_45 [1] : vector<8x32xf32> to vector<8xf32>
    %130 = vector.shape_cast %129 : vector<8xf32> to vector<8x1xf32>
    %cst_46 = arith.constant 3.200000e+01 : f32
    %131 = vector.broadcast %cst_46 : f32 to vector<8x1xf32>
    %132 = arith.divf %130, %131 : vector<8x1xf32>
    %133 = vector.broadcast %125 : vector<8x1xf32> to vector<8x32xf32>
    %134 = arith.subf %121, %133 : vector<8x32xf32>
    %cst_47 = arith.constant 9.99999996E-13 : f32
    %135 = vector.broadcast %cst_47 : f32 to vector<8x1xf32>
    %136 = arith.addf %132, %135 : vector<8x1xf32>
    %137 = math.rsqrt %136 : vector<8x1xf32>
    %138 = vector.broadcast %137 : vector<8x1xf32> to vector<8x32xf32>
    %139 = arith.mulf %134, %138 : vector<8x32xf32>
    %140 = vector.broadcast %7 : vector<1x32xf32> to vector<8x32xf32>
    %141 = arith.mulf %139, %140 : vector<8x32xf32>
    %142 = vector.broadcast %8 : vector<1x32xf32> to vector<8x32xf32>
    %143 = arith.addf %141, %142 : vector<8x32xf32>
    %c0_48 = arith.constant 0 : index
    %c0_49 = arith.constant 0 : index
    %144 = vector.load %arg8[%c0_48, %c0_49] : memref<33x64xf32, #tpu.memory_space<vmem>>, vector<33x64xf32>
    %145 = vector.extract_strided_slice %144 {offsets = [0, 0], sizes = [32, 64], strides = [1, 1]} : vector<33x64xf32> to vector<32x64xf32>
    %cst_50 = arith.constant dense<0.000000e+00> : vector<8x64xf32>
    %146 = tpu.matmul %143, %145, %cst_50 {dimension_numbers = #tpu.dot_dimension_numbers<[1], [0], [0], [1], [0, 0, 1, 1], [], []>} : vector<8x32xf32>, vector<32x64xf32>, vector<8x64xf32> -> vector<8x64xf32>
    %147 = vector.extract_strided_slice %144 {offsets = [32, 0], sizes = [1, 64], strides = [1, 1]} : vector<33x64xf32> to vector<1x64xf32>
    %148 = vector.broadcast %147 : vector<1x64xf32> to vector<8x64xf32>
    %149 = arith.addf %146, %148 : vector<8x64xf32>
    %150 = arith.mulf %149, %149 : vector<8x64xf32>
    %151 = arith.mulf %149, %150 : vector<8x64xf32>
    %cst_51 = arith.constant 4.471500e-02 : f32
    %152 = vector.broadcast %cst_51 : f32 to vector<8x64xf32>
    %153 = arith.mulf %152, %151 : vector<8x64xf32>
    %154 = arith.addf %149, %153 : vector<8x64xf32>
    %cst_52 = arith.constant 0.797884583 : f32
    %155 = vector.broadcast %cst_52 : f32 to vector<8x64xf32>
    %156 = arith.mulf %155, %154 : vector<8x64xf32>
    %157 = math.tanh %156 : vector<8x64xf32>
    %cst_53 = arith.constant 1.000000e+00 : f32
    %158 = vector.broadcast %cst_53 : f32 to vector<8x64xf32>
    %159 = arith.addf %158, %157 : vector<8x64xf32>
    %cst_54 = arith.constant 5.000000e-01 : f32
    %160 = vector.broadcast %cst_54 : f32 to vector<8x64xf32>
    %161 = arith.mulf %160, %159 : vector<8x64xf32>
    %162 = arith.mulf %149, %161 : vector<8x64xf32>
    %c0_55 = arith.constant 0 : index
    %c0_56 = arith.constant 0 : index
    %163 = vector.load %arg9[%c0_55, %c0_56] : memref<64x32xf32, #tpu.memory_space<vmem>>, vector<64x32xf32>
    %cst_57 = arith.constant dense<0.000000e+00> : vector<8x32xf32>
    %164 = tpu.matmul %162, %163, %cst_57 {dimension_numbers = #tpu.dot_dimension_numbers<[1], [0], [0], [1], [0, 0, 1, 1], [], []>} : vector<8x64xf32>, vector<64x32xf32>, vector<8x32xf32> -> vector<8x32xf32>
    %165 = vector.broadcast %9 : vector<1x32xf32> to vector<8x32xf32>
    %166 = arith.addf %164, %165 : vector<8x32xf32>
    %167 = arith.addf %143, %166 : vector<8x32xf32>
    %cst_58 = arith.constant dense<0.000000e+00> : vector<8xf32>
    %168 = vector.multi_reduction <add>, %167, %cst_58 [1] : vector<8x32xf32> to vector<8xf32>
    %169 = vector.shape_cast %168 : vector<8xf32> to vector<8x1xf32>
    %cst_59 = arith.constant 3.200000e+01 : f32
    %170 = vector.broadcast %cst_59 : f32 to vector<8x1xf32>
    %171 = arith.divf %169, %170 : vector<8x1xf32>
    %172 = vector.broadcast %171 : vector<8x1xf32> to vector<8x32xf32>
    %173 = arith.subf %167, %172 : vector<8x32xf32>
    %174 = arith.mulf %173, %173 : vector<8x32xf32>
    %cst_60 = arith.constant dense<0.000000e+00> : vector<8xf32>
    %175 = vector.multi_reduction <add>, %174, %cst_60 [1] : vector<8x32xf32> to vector<8xf32>
    %176 = vector.shape_cast %175 : vector<8xf32> to vector<8x1xf32>
    %cst_61 = arith.constant 3.200000e+01 : f32
    %177 = vector.broadcast %cst_61 : f32 to vector<8x1xf32>
    %178 = arith.divf %176, %177 : vector<8x1xf32>
    %179 = vector.broadcast %171 : vector<8x1xf32> to vector<8x32xf32>
    %180 = arith.subf %167, %179 : vector<8x32xf32>
    %cst_62 = arith.constant 9.99999996E-13 : f32
    %181 = vector.broadcast %cst_62 : f32 to vector<8x1xf32>
    %182 = arith.addf %178, %181 : vector<8x1xf32>
    %183 = math.rsqrt %182 : vector<8x1xf32>
    %184 = vector.broadcast %183 : vector<8x1xf32> to vector<8x32xf32>
    %185 = arith.mulf %180, %184 : vector<8x32xf32>
    %186 = vector.broadcast %10 : vector<1x32xf32> to vector<8x32xf32>
    %187 = arith.mulf %185, %186 : vector<8x32xf32>
    %188 = vector.broadcast %11 : vector<1x32xf32> to vector<8x32xf32>
    %189 = arith.addf %187, %188 : vector<8x32xf32>
    %c0_63 = arith.constant 0 : index
    %c0_64 = arith.constant 0 : index
    %190 = vector.load %arg12[%c0_63, %c0_64] : memref<8x32xf32, #tpu.memory_space<vmem>>, vector<8x32xf32>
    tpu.vector_store %arg12[%c0_63, %c0_64], %189 {strides = array<i32>} : memref<8x32xf32, #tpu.memory_space<vmem>>, vector<8x32xf32>,
    %c0_65 = arith.constant 0 : index
    %c0_66 = arith.constant 0 : index
    %191 = vector.load %arg10[%c0_65, %c0_66] : memref<2x33xf32, #tpu.memory_space<vmem>>, vector<2x33xf32>
    %192 = vector.extract_strided_slice %191 {offsets = [0, 0], sizes = [2, 32], strides = [1, 1]} : vector<2x33xf32> to vector<2x32xf32>
    %cst_67 = arith.constant dense<0.000000e+00> : vector<2x8xf32>
    %193 = tpu.matmul %192, %189, %cst_67 {dimension_numbers = #tpu.dot_dimension_numbers<[1], [1], [0], [0], [0, 0, 1, 0], [], []>} : vector<2x32xf32>, vector<8x32xf32>, vector<2x8xf32> -> vector<2x8xf32>
    %194 = vector.extract_strided_slice %191 {offsets = [0, 32], sizes = [2, 1], strides = [1, 1]} : vector<2x33xf32> to vector<2x1xf32>
    %195 = vector.broadcast %194 : vector<2x1xf32> to vector<2x8xf32>
    %196 = arith.addf %193, %195 : vector<2x8xf32>
    %c0_68 = arith.constant 0 : index
    %c0_69 = arith.constant 0 : index
    %c0_70 = arith.constant 0 : index
    %197 = vector.load %arg11[%c0_68, %c0_69, %c0_70] : memref<1x2x8xf32, #tpu.memory_space<vmem>>, vector<1x2x8xf32>
    %198 = vector.shape_cast %197 : vector<1x2x8xf32> to vector<2x8xf32>
    %199 = vector.shape_cast %196 : vector<2x8xf32> to vector<1x2x8xf32>
    tpu.vector_store %arg11[%c0_68, %c0_69, %c0_70], %199 {strides = array<i32>} : memref<1x2x8xf32, #tpu.memory_space<vmem>>, vector<1x2x8xf32>,
    %200 = arith.index_cast %arg0 : i32 to index
    %201 = memref.load %arg1[%200] : memref<2xi32, #tpu.memory_space<smem>>
    %c0_i32 = arith.constant 0 : i32
    %c8_i32 = arith.constant 8 : i32
    %202 = arith.maxsi %c0_i32, %201 : i32
    %203 = arith.minsi %c8_i32, %202 : i32
    %204 = arith.index_cast %arg0 : i32 to index
    %205 = memref.load %arg2[%204] : memref<2xi32, #tpu.memory_space<smem>>
    %c0_i32_71 = arith.constant 0 : i32
    %c8_i32_72 = arith.constant 8 : i32
    %206 = arith.maxsi %c0_i32_71, %205 : i32
    %207 = arith.minsi %c8_i32_72, %206 : i32
    %c8_i32_73 = arith.constant 8 : i32
    %208 = arith.cmpi ne, %203, %c8_i32_73 : i32
    %209 = arith.extui %208 : i1 to i32
    %210 = arith.sitofp %209 : i32 to f32
    %c8_i32_74 = arith.constant 8 : i32
    %211 = arith.cmpi ne, %207, %c8_i32_74 : i32
    %212 = arith.extui %211 : i1 to i32
    %213 = arith.sitofp %212 : i32 to f32
    %214 = tpu.iota {dimensions = array<i32: 1>} : vector<1x8xi32>
    %cst_75 = arith.constant dense<0xFF800000> : vector<2xf32>
    %215 = vector.multi_reduction <maximumf>, %196, %cst_75 [1] : vector<2x8xf32> to vector<2xf32>
    %216 = vector.shape_cast %215 : vector<2xf32> to vector<2x1xf32>
    %217 = vector.broadcast %216 : vector<2x1xf32> to vector<2x8xf32>
    %218 = arith.subf %196, %217 : vector<2x8xf32>
    %219 = math.exp %218 : vector<2x8xf32>
    %cst_76 = arith.constant dense<0.000000e+00> : vector<2xf32>
    %220 = vector.multi_reduction <add>, %219, %cst_76 [1] : vector<2x8xf32> to vector<2xf32>
    %221 = vector.shape_cast %220 : vector<2xf32> to vector<2x1xf32>
    %222 = math.log %221 : vector<2x1xf32>
    %223 = arith.addf %216, %222 : vector<2x1xf32>
    %224 = vector.broadcast %203 : i32 to vector<1x8xi32>
    %225 = arith.cmpi eq, %214, %224 : vector<1x8xi32>
    %226 = vector.extract_strided_slice %196 {offsets = [0, 0], sizes = [1, 8], strides = [1, 1]} : vector<2x8xf32> to vector<1x8xf32>
    %cst_77 = arith.constant 0.000000e+00 : f32
    %227 = vector.broadcast %cst_77 : f32 to vector<1x8xf32>
    %228 = arith.select %225, %226, %227 : vector<1x8xi1>, vector<1x8xf32>
    %cst_78 = arith.constant dense<0.000000e+00> : vector<1xf32>
    %229 = vector.multi_reduction <add>, %228, %cst_78 [1] : vector<1x8xf32> to vector<1xf32>
    %230 = vector.shape_cast %229 : vector<1xf32> to vector<1x1xf32>
    %231 = vector.broadcast %207 : i32 to vector<1x8xi32>
    %232 = arith.cmpi eq, %214, %231 : vector<1x8xi32>
    %233 = vector.extract_strided_slice %196 {offsets = [1, 0], sizes = [1, 8], strides = [1, 1]} : vector<2x8xf32> to vector<1x8xf32>
    %cst_79 = arith.constant 0.000000e+00 : f32
    %234 = vector.broadcast %cst_79 : f32 to vector<1x8xf32>
    %235 = arith.select %232, %233, %234 : vector<1x8xi1>, vector<1x8xf32>
    %cst_80 = arith.constant dense<0.000000e+00> : vector<1xf32>
    %236 = vector.multi_reduction <add>, %235, %cst_80 [1] : vector<1x8xf32> to vector<1xf32>
    %237 = vector.shape_cast %236 : vector<1xf32> to vector<1x1xf32>
    %238 = vector.extract_strided_slice %223 {offsets = [0, 0], sizes = [1, 1], strides = [1, 1]} : vector<2x1xf32> to vector<1x1xf32>
    %239 = arith.subf %238, %230 : vector<1x1xf32>
    %240 = vector.broadcast %210 : f32 to vector<1x1xf32>
    %241 = arith.mulf %239, %240 : vector<1x1xf32>
    %242 = vector.extract_strided_slice %223 {offsets = [1, 0], sizes = [1, 1], strides = [1, 1]} : vector<2x1xf32> to vector<1x1xf32>
    %243 = arith.subf %242, %237 : vector<1x1xf32>
    %244 = vector.broadcast %213 : f32 to vector<1x1xf32>
    %245 = arith.mulf %243, %244 : vector<1x1xf32>
    %246 = tpu.iota {dimensions = array<i32: 1>} : vector<1x4xi32>
    %c0_i32_81 = arith.constant 0 : i32
    %247 = vector.broadcast %c0_i32_81 : i32 to vector<1x4xi32>
    %248 = arith.cmpi eq, %246, %247 : vector<1x4xi32>
    %cst_82 = arith.constant 0.000000e+00 : f32
    %249 = vector.shape_cast %241 : vector<1x1xf32> to vector<1x1xf32>
    %250 = vector.broadcast %249 : vector<1x1xf32> to vector<1x4xf32>
    %251 = vector.broadcast %cst_82 : f32 to vector<1x4xf32>
    %252 = arith.select %248, %250, %251 : vector<1x4xi1>, vector<1x4xf32>
    %c1_i32 = arith.constant 1 : i32
    %253 = vector.broadcast %c1_i32 : i32 to vector<1x4xi32>
    %254 = arith.cmpi eq, %246, %253 : vector<1x4xi32>
    %cst_83 = arith.constant 0.000000e+00 : f32
    %255 = vector.shape_cast %245 : vector<1x1xf32> to vector<1x1xf32>
    %256 = vector.broadcast %255 : vector<1x1xf32> to vector<1x4xf32>
    %257 = vector.broadcast %cst_83 : f32 to vector<1x4xf32>
    %258 = arith.select %254, %256, %257 : vector<1x4xi1>, vector<1x4xf32>
    %259 = arith.addf %252, %258 : vector<1x4xf32>
    %c2_i32 = arith.constant 2 : i32
    %260 = vector.broadcast %c2_i32 : i32 to vector<1x4xi32>
    %261 = arith.cmpi eq, %246, %260 : vector<1x4xi32>
    %cst_84 = arith.constant 0.000000e+00 : f32
    %262 = vector.broadcast %210 : f32 to vector<1x4xf32>
    %263 = vector.broadcast %cst_84 : f32 to vector<1x4xf32>
    %264 = arith.select %261, %262, %263 : vector<1x4xi1>, vector<1x4xf32>
    %265 = arith.addf %259, %264 : vector<1x4xf32>
    %c3_i32 = arith.constant 3 : i32
    %266 = vector.broadcast %c3_i32 : i32 to vector<1x4xi32>
    %267 = arith.cmpi eq, %246, %266 : vector<1x4xi32>
    %cst_85 = arith.constant 0.000000e+00 : f32
    %268 = vector.broadcast %213 : f32 to vector<1x4xf32>
    %269 = vector.broadcast %cst_85 : f32 to vector<1x4xf32>
    %270 = arith.select %267, %268, %269 : vector<1x4xi1>, vector<1x4xf32>
    %271 = arith.addf %265, %270 : vector<1x4xf32>
    %c0_86 = arith.constant 0 : index
    %c0_87 = arith.constant 0 : index
    %c0_88 = arith.constant 0 : index
    %272 = vector.load %arg13[%c0_86, %c0_87, %c0_88] : memref<1x1x4xf32, #tpu.memory_space<vmem>>, vector<1x1x4xf32>
    %273 = vector.shape_cast %272 : vector<1x1x4xf32> to vector<1x4xf32>
    %274 = vector.shape_cast %271 : vector<1x4xf32> to vector<1x1x4xf32>
    tpu.vector_store %arg13[%c0_86, %c0_87, %c0_88], %274 {strides = array<i32>} : memref<1x1x4xf32, #tpu.memory_space<vmem>>, vector<1x1x4xf32>,
    return
  }
  func.func @transform_0(%arg0: i32, %arg1: memref<2xi32, #tpu.memory_space<smem>>, %arg2: memref<2xi32, #tpu.memory_space<smem>>) -> (i32, i32) {
    %c0_i32 = arith.constant 0 : i32
    %c0_i32_0 = arith.constant 0 : i32
    return %arg0, %c0_i32 : i32, i32
  }
  func.func @transform_1(%arg0: i32, %arg1: memref<2xi32, #tpu.memory_space<smem>>, %arg2: memref<2xi32, #tpu.memory_space<smem>>) -> (i32, i32, i32) {
    %c0_i32 = arith.constant 0 : i32
    %c0_i32_0 = arith.constant 0 : i32
    %c0_i32_1 = arith.constant 0 : i32
    return %arg0, %c0_i32, %c0_i32_0 : i32, i32, i32
  }
  func.func @transform_2(%arg0: i32, %arg1: memref<2xi32, #tpu.memory_space<smem>>, %arg2: memref<2xi32, #tpu.memory_space<smem>>) -> (i32, i32) {
    %c0_i32 = arith.constant 0 : i32
    %c0_i32_0 = arith.constant 0 : i32
    %c0_i32_1 = arith.constant 0 : i32
    return %c0_i32, %c0_i32_0 : i32, i32
  }
  func.func @transform_3(%arg0: i32, %arg1: memref<2xi32, #tpu.memory_space<smem>>, %arg2: memref<2xi32, #tpu.memory_space<smem>>) -> (i32, i32) {
    %c0_i32 = arith.constant 0 : i32
    %c0_i32_0 = arith.constant 0 : i32
    %c0_i32_1 = arith.constant 0 : i32
    return %c0_i32, %c0_i32_0 : i32, i32
  }
  func.func @transform_4(%arg0: i32, %arg1: memref<2xi32, #tpu.memory_space<smem>>, %arg2: memref<2xi32, #tpu.memory_space<smem>>) -> (i32, i32) {
    %c0_i32 = arith.constant 0 : i32
    %c0_i32_0 = arith.constant 0 : i32
    %c0_i32_1 = arith.constant 0 : i32
    return %c0_i32, %c0_i32_0 : i32, i32
  }
  func.func @transform_5(%arg0: i32, %arg1: memref<2xi32, #tpu.memory_space<smem>>, %arg2: memref<2xi32, #tpu.memory_space<smem>>) -> (i32, i32) {
    %c0_i32 = arith.constant 0 : i32
    %c0_i32_0 = arith.constant 0 : i32
    %c0_i32_1 = arith.constant 0 : i32
    return %c0_i32, %c0_i32_0 : i32, i32
  }
  func.func @transform_6(%arg0: i32, %arg1: memref<2xi32, #tpu.memory_space<smem>>, %arg2: memref<2xi32, #tpu.memory_space<smem>>) -> (i32, i32) {
    %c0_i32 = arith.constant 0 : i32
    %c0_i32_0 = arith.constant 0 : i32
    %c0_i32_1 = arith.constant 0 : i32
    return %c0_i32, %c0_i32_0 : i32, i32
  }
  func.func @transform_7(%arg0: i32, %arg1: memref<2xi32, #tpu.memory_space<smem>>, %arg2: memref<2xi32, #tpu.memory_space<smem>>) -> (i32, i32) {
    %c0_i32 = arith.constant 0 : i32
    %c0_i32_0 = arith.constant 0 : i32
    %c0_i32_1 = arith.constant 0 : i32
    return %c0_i32, %c0_i32_0 : i32, i32
  }
  func.func @transform_8(%arg0: i32, %arg1: memref<2xi32, #tpu.memory_space<smem>>, %arg2: memref<2xi32, #tpu.memory_space<smem>>) -> (i32, i32, i32) {
    %c0_i32 = arith.constant 0 : i32
    %c0_i32_0 = arith.constant 0 : i32
    %c0_i32_1 = arith.constant 0 : i32
    return %arg0, %c0_i32, %c0_i32_0 : i32, i32, i32
  }
  func.func @transform_9(%arg0: i32, %arg1: memref<2xi32, #tpu.memory_space<smem>>, %arg2: memref<2xi32, #tpu.memory_space<smem>>) -> (i32, i32) {
    %c0_i32 = arith.constant 0 : i32
    %c0_i32_0 = arith.constant 0 : i32
    return %arg0, %c0_i32 : i32, i32
  }
  func.func @transform_10(%arg0: i32, %arg1: memref<2xi32, #tpu.memory_space<smem>>, %arg2: memref<2xi32, #tpu.memory_space<smem>>) -> (i32, i32, i32) {
    %c0_i32 = arith.constant 0 : i32
    %c0_i32_0 = arith.constant 0 : i32
    %c0_i32_1 = arith.constant 0 : i32
    return %arg0, %c0_i32, %c0_i32_0 : i32, i32, i32
  }
}

</mosaic_0001>

<bundles_post_ra>
// kernel: qa_model_forward.1
= control target key start
LH: loop header
LB: loop body
LE: loop exit
PB: predicated region body
PF: predicated region fallthrough
CT: control target
= control target key end

     0   :  { %s1490_s27 = smov [#allocation4]   ;;  %s1491_s28 = smov [#allocation5]   ;;  %s1892_s0 = inlined_call_operand.vmem [shape: s32[2], index: 0, kind: input, shape index: {}]   ;;  %s1893_s2 = inlined_call_operand.vmem [shape: f32[16,32], index: 2, kind: input, shape index: {}]   ;;  %s1894_s3 = inlined_call_operand.vmem [shape: f32[2,1,8], index: 3, kind: input, shape index: {}]   ;;  %s1895_s4 = inlined_call_operand.vmem [shape: f32[8,32], index: 4, kind: input, shape index: {}]   ;;  %s1896_s5 = inlined_call_operand.vmem [shape: f32[33,96], index: 5, kind: input, shape index: {}]   ;;  %s1897_s6 = inlined_call_operand.vmem [shape: f32[32,32], index: 6, kind: input, shape index: {}]   ;;  %s1898_s7 = inlined_call_operand.vmem [shape: f32[33,64], index: 7, kind: input, shape index: {}]   ;;  %s1899_s8 = inlined_call_operand.vmem [shape: f32[64,32], index: 8, kind: input, shape index: {}]   ;;  %s1900_s9 = inlined_call_operand.vmem [shape: f32[2,33], index: 9, kind: input, shape index: {}]   ;;  %s1901_s10 = inlined_call_operand.hbm [shape: f32[2,2,8], index: 10, kind: output, shape index: {0}]   ;;  %s1902_s11 = inlined_call_operand.hbm [shape: f32[16,32], index: 11, kind: output, shape index: {1}]   ;;  %s1903_s12 = inlined_call_operand.vmem [shape: f32[2,1,4], index: 12, kind: output, shape index: {2}]   ;;  %s1904_s1 = inlined_call_operand.vmem [shape: s32[2], index: 1, kind: input, shape index: {}]  }
   0x1   :  { %1905 = sst [smem:[#allocation14_spill]] %s1893_s2  ;;  %s19_s23 = sshll.u32 %s1892_s0, 4  ;;  %s20_s23 = int_to_ptr.vmem [resolvable:$true] %s19_s23 }
   0x2   :  { %1906 = sst [smem:[#allocation15_spill]] %s1894_s3  ;;  %s24_s26 = sshll.u32 %s1904_s1, 4  ;;  %s25_s26 = int_to_ptr.vmem [resolvable:$true] %s24_s26 }
   0x3   :  { %1907 = sst [smem:[#allocation16_spill]] %s1895_s4 }
   0x4   :  { %1908 = sst [smem:[#allocation17_spill]] %s1896_s5 }
   0x5   :  { %1909 = sst [smem:[#allocation18_spill]] %s1897_s6 }
   0x6   :  { %1910 = sst [smem:[#allocation19_spill]] %s1898_s7 }
   0x7   :  { %1911 = sst [smem:[#allocation20_spill]] %s1899_s8 }
   0x8   :  { %1912 = sst [smem:[#allocation21_spill]] %s1900_s9 }
   0x9   :  { %22 = dma.vmem_to_smem %s20_s23, 16, %s1490_s27, [#allocation3] }
   0xa   :  { %27 = dma.vmem_to_smem %s25_s26, 16, %s1491_s28, [#allocation3] }
   0xb   :  { %1464 = dma.done.wait [#allocation3], 32 }
   0xc   :  { %1465 = vsyncadd [#allocation3], 4294967264 }
   0xd   :  { %30 = sfence }
   0xe   :  { %31 = vsyncpa [#allocation7], 0 }
   0xf   :  { %33 = vsyncpa [#allocation7 + $0x1], 0 }
  0x10   :  { %34 = vsyncpa [#allocation9], 0 }
  0x11   :  { %36 = vsyncpa [#allocation9 + $0x1], 0  ;;  %s1579_s29 = smov 0   ;;  %s1581_s0 = smov 0  }
  0x12   :  { %s1583_s30 = smov 0   ;;  %s1585_s1 = smov 0  }
  0x13 LB: > { %s1600_s13 = sadd.s32 4294967295, %s1488_s1   ;;  %s1226_s14 = sadd.s32 4294967294, %s1488_s1   ;;  %s1488_s1 = sphi %s1585_s1, %s1930_s1   ;;  %s1484_s30 = sphi %s1583_s30, %s1929_s30   ;;  %s1480_s0 = sphi %s1581_s0, %s1928_s0   ;;  %s1476_s29 = sphi %s1579_s29, %s1927_s29  }
  0x14   : > { %s1604_s15 = sadd.s32 1, %s1488_s1   ;;  %s227_s16 = sadd.s32 1, %s1484_s30 }
  0x15   : > { %s224_s17 = ssub.s32 %s1488_s1, %s1604_s15  ;;  %p237_p0 = scmp.ne.s32.totalorder %s1484_s30, %s1480_s0 }
  0x16   : > { %p225_p1 = scmp.eq.s32.totalorder %s224_s17, 0  ;;  %p238_p2 = scmp.eq.s32.totalorder %s1600_s13, 1 }
  0x17   : > { %p243_p3 = scmp.ne.s32.totalorder %s1480_s0, %s1476_s29  ;;  %p244_p4 = scmp.eq.s32.totalorder %s1226_s14, 1 }
  0x18   : > { %s1615_s18 = scalar_select %p225_p1, %s1484_s30, %s227_s16  }
  0x19   : > { %p1617_p5 = por %p238_p2, %p237_p0  ;;  %p1621_p6 = por %p244_p4, %p243_p3 }
  0x1a   : > { %1913 = sst [smem:[#allocation13_spill]] %s1615_s18  ;;  %p1229_p7 = scmp.ge.s32.totalorder %s1488_s1, 1 }
  0x1b   : > { %p345_p8 = scmp.lt.s32.totalorder %s1488_s1, 3 }
  0x1d   : > { %p346_p9 = pnand %p1229_p7, %p345_p8 }
  0x1e   : > { %p393_p10 = scmp.lt.s32.totalorder (!%p346_p9), %s1600_s13, 1  ;;  %s1916_s3 = sld [smem:[#allocation15_spill]] (!%p346_p9) }
  0x1f   : > { %349 = sbr.rel (%p346_p9) target bundleno = 2589 (0xa1d), region = 52  ;;  %s1917_s2 = sld [smem:[#allocation14_spill]] (!%p346_p9) }
  0x20   : > { %s1918_s5 = sld [smem:[#allocation17_spill]] (!%p346_p9)  ;;  %s1494_s23 = smov (!%p346_p9), 120  }
  0x21   : > { %s1919_s4 = sld [smem:[#allocation16_spill]] (!%p346_p9)  ;;  %s1495_s24 = smov (!%p346_p9), 96  }
  0x22   : > { %s1496_s26 = smov (!%p346_p9), 80   ;;  %s1497_s27 = smov (!%p346_p9), 88  }
  0x23   : > { %s1499_s14 = smov (!%p346_p9), 72   ;;  %s1922_s6 = sld [smem:[#allocation18_spill]] (!%p346_p9) }
  0x24   : > { %s1629_s21 = scalar_select %p393_p10, %s1600_s13, 1  ;;  %vm406_vm0 = vcmask 261120   ;;  %v1492_v2 = vmov 32.0   ;;  %vm472_vm5 = vcmask 64512  }
  0x25   : > { %1338 = vrcp.f32 %v1492_v2  ;;  %s1923_s7 = sld [smem:[#allocation19_spill]] }
  0x26   : > { %s1232_s22 = sshll.u32 %s1629_s21, 3  ;;  %s399_s25 = scalar_lea.vmem %s1916_s3, %s1629_s21  ;;  %v443_v14 = vld [vmem:[%s1918_s5 + $0x18] sm:$0xff]  ;;  %v442_v15 = vld [vmem:[%s1918_s5 + $0x10] sm:$0xff]  ;;  %v441_v16 = vld [vmem:[%s1918_s5 + $0x8] sm:$0xff] }
  0x27   : > { %s396_s28 = scalar_lea.vmem %s1917_s2, %s1232_s22  ;;  %461 = vmatpush.msra.mxu0 %v443_v14  ;;  %v440_v17 = vld [vmem:[%s1918_s5] sm:$0xff]  ;;  %s1493_s22 = smov 112  }
  0x28   : > { %v403_v0 = vld [vmem:[%s396_s28] sm:$0xff]  ;;  %s1498_s28 = smov 104   ;;  %s1924_s8 = sld [smem:[#allocation20_spill]] }
  0x29   : > { %v407_v1 = vsel %vm406_vm0, %v403_v0, 0.0  ;;  %462 = vmatpush.msra.mxu0 %v442_v15  ;;  %v1660_v26 = vld [vmem:[%s1919_s4] sm:$0xff]  ;;  %s1925_s9 = sld [smem:[#allocation21_spill]] }
  0x2a   : > { %408 = vadd.xlane.f32.xlu0 %v407_v1  ;;  %v436_v28 = vperm.slane %v1660_v26, 0  ;;  %v438_v31 = vperm.slane %v1660_v26, 1  ;;  %v1335_v34 = vld [vmem:[%s1918_s5 + $0x20] ss:$0 sm:$0xff] }
  0x2b   : > { %v1339_v3 = vpop.eup %1338  ;;  %463 = vmatpush.msra.mxu0 %v441_v16  ;;  %v1336_v44 = vld [vmem:[%s399_s25] ss:$0 sm:$0xff]  ;;  %s1500_s25 = smov 64  }
  0x2c   : > { %v411_v4 = vmul.f32 32.0, %v1339_v3  ;;  %vm415_vm1 = vweird.f32 %v1339_v3 }
  0x2d   : > { %464 = vmatpush.msra.mxu0 %v440_v17 }
  0x2e   : > { %v412_v5 = vsub.f32 1.0, %v411_v4 }
  0x30   : > { %v413_v6 = vmul.f32 %v1339_v3, %v412_v5 }
  0x32   : > { %v414_v7 = vadd.f32 %v1339_v3, %v413_v6 }
  0x34   : > { %v1640_v8 = vsel %vm415_vm1, %v1339_v3, %v414_v7 }
  0x9d   : > { %v409_v9 = vpop.xlane.xlu0 %408 }
  0x9e   : > { %v417_v10 = vmul.f32 %v1640_v8, %v409_v9 }
  0xa0   : > { %v418_v11 = vsub.f32 %v403_v0, %v417_v10 }
  0xa2   : > { %v419_v12 = vmul.f32 %v418_v11, %v418_v11 }
  0xa4   : > { %v420_v13 = vsel %vm406_vm0, %v419_v12, 0.0 }
  0xa5   : > { %421 = vadd.xlane.f32.xlu0 %v420_v13 }
 0x118   : > { %v422_v18 = vpop.xlane.xlu0 %421 }
 0x119   : > { %v423_v19 = vmul.f32 %v422_v18, %v1640_v8 }
 0x11b   : > { %v424_v20 = vadd.f32 1e-12, %v423_v19 }
 0x11d   : > { %1340 = vrsqrt.f32 %v424_v20  ;;  %vm431_vm3 = vweird.f32 %v424_v20 }
 0x123   : > { %v1341_v21 = vpop.eup %1340 }
 0x124   : > { %v426_v22 = vmul.f32 %v1341_v21, %v424_v20  ;;  %vm432_vm2 = vweird.f32 %v1341_v21 }
 0x125   : > { %vm433_vm4 = vmor %vm431_vm3, %vm432_vm2 }
 0x126   : > { %v427_v23 = vmul.f32 %v1341_v21, %v426_v22 }
 0x128   : > { %v428_v24 = vmul.f32 0.5, %v427_v23 }
 0x12a   : > { %v429_v25 = vsub.f32 1.5, %v428_v24 }
 0x12c   : > { %v430_v27 = vmul.f32 %v1341_v21, %v429_v25 }
 0x12e   : > { %v434_v29 = vsel %vm433_vm4, %v1341_v21, %v430_v27 }
 0x12f   : > { %v435_v30 = vmul.f32 %v434_v29, %v418_v11 }
 0x131   : > { %v437_v32 = vmul.f32 %v436_v28, %v435_v30 }
 0x133   : > { %v1664_v33 = vadd.f32 %v438_v31, %v437_v32 }
 0x135   : > { %1233 = vmatmul.msk.f32.vlgmr.msra.gmra.mxu0 %vm406_vm0, %v1664_v33 }
 0x1b2   : > { %v466_v35 = vpop.f32.mrf.mxu0 }
 0x1b3   : > { %v1671_v36 = vadd.f32 %v1335_v34, %v466_v35 }
 0x1b5   : > { %639 = vrot.lane.b32.xlu0 %v1671_v36, %s1493_s22  ;;  %553 = vrot.lane.b32.xlu2 %v1671_v36, %s1494_s23  ;;  %s1501_s22 = smov 56   ;;  %s1502_s23 = smov 40  }
 0x1b6   : > { %470 = vrot.lane.b32.xlu1 %v1671_v36, %s1495_s24  ;;  %s1503_s24 = smov 48  }
 0x1bd   : > { %641 = vrot.lane.b32.xlu2 %v1671_v36, %s1496_s26  ;;  %s1504_s26 = smov 8  }
 0x1be   : > { %555 = vrot.lane.b32.xlu1 %v1671_v36, %s1497_s27  ;;  %s1505_s27 = smov 24  }
 0x1c5   : > { %725 = vrot.lane.b32.xlu2 %v1671_v36, %s1498_s28  ;;  %s1506_s28 = smov 16  }
 0x1c6   : > { %727 = vrot.lane.b32.xlu1 %v1671_v36, %s1499_s14 }
 0x20f   : > { %v554_v37 = vpop.permute.xlu2 %553 }
 0x217   : > { %v642_v39 = vpop.permute.xlu2 %641 }
 0x21f   : > { %v726_v43 = vpop.permute.xlu2 %725 }
 0x227   : > { %v640_v41 = vpop.permute.xlu0 %639 }
 0x228   : > { %v471_v38 = vpop.permute.xlu1 %470 }
 0x229   : > { %1234 = vmatpush.xpose.msk.msra.mxu1 %vm472_vm5, %v471_v38 }
 0x22c   : > { %1235 = vmatmul.msk.f32.vlgmr.msra.gmra.mxu1 %vm472_vm5, %v1671_v36 }
 0x22d   : > { %1240 = vmatpush.xpose.msk.msrb.mxu1 %vm472_vm5, %v642_v39 }
 0x230   : > { %v556_v40 = vpop.permute.xlu1 %555 }
 0x231   : > { %1237 = vmatpush.xpose.msk.msra.mxu3 %vm472_vm5, %v556_v40 }
 0x234   : > { %1238 = vmatmul.msk.f32.vlgmr.msra.gmra.mxu3 %vm472_vm5, %v554_v37  ;;  %1241 = vmatmul.msk.f32.vlgmr.msrb.gmra.mxu1 %vm472_vm5, %v640_v41 }
 0x238   : > { %v728_v42 = vpop.permute.xlu1 %727 }
 0x239   : > { %1243 = vmatpush.xpose.msk.msra.mxu1 %vm472_vm5, %v728_v42 }
 0x23c   : > { %1244 = vmatmul.msk.f32.vlgmr.msra.gmra.mxu1 %vm472_vm5, %v726_v43 }
 0x2a9   : > { %v494_v45 = vpop.f32.mrf.mxu1 }
 0x2aa   : > { %v497_v46 = vmul.f32 0.35355338, %v494_v45 }
 0x2ac   : > { %v501_v47 = vadd.f32 %v1336_v44, %v497_v46 }
 0x2ae   : > { %v502_v48 = vsel %vm472_vm5, %v501_v47, -inf }
 0x2af   : > { %503 = vmax.xlane.f32.xlu1 %v502_v48 }
 0x2b1   : > { %v664_v49 = vpop.f32.mrf.mxu1 }
 0x2b2   : > { %v667_v50 = vmul.f32 0.35355338, %v664_v49 }
 0x2b4   : > { %v668_v51 = vadd.f32 %v1336_v44, %v667_v50 }
 0x2b6   : > { %v669_v52 = vsel %vm472_vm5, %v668_v51, -inf }
 0x2b7   : > { %670 = vmax.xlane.f32.xlu0 %v669_v52  ;;  %v578_v53 = vpop.f32.mrf.mxu3 }
 0x2b8   : > { %v581_v54 = vmul.f32 0.35355338, %v578_v53 }
 0x2b9   : > { %v750_v55 = vpop.f32.mrf.mxu1 }
 0x2ba   : > { %v582_v56 = vadd.f32 %v1336_v44, %v581_v54  ;;  %v753_v57 = vmul.f32 0.35355338, %v750_v55 }
 0x2bc   : > { %v583_v58 = vsel %vm472_vm5, %v582_v56, -inf  ;;  %v754_v59 = vadd.f32 %v1336_v44, %v753_v57 }
 0x2bd   : > { %584 = vmax.xlane.f32.xlu2 %v583_v58 }
 0x2be   : > { %v755_v60 = vsel %vm472_vm5, %v754_v59, -inf }
 0x2c5   : > { %756 = vmax.xlane.f32.xlu2 %v755_v60 }
 0x2dd   : > { %526 = vrot.lane.b32.xlu2 %v1671_v36, %s1500_s25  ;;  %s999_s25 = sld [smem:[#allocation4 + %s1600_s13]] }
 0x2e3   : > { %p1000_p13 = scmp.gt.s32.totalorder %s999_s25, 0  ;;  %p1251_p0 = scmp.lt.s32.totalorder %s999_s25, 8 }
 0x2e5   : > { %s1934_s25 = smov (!%p1000_p13, %s999_s25), 0 }
 0x2e6   : > { %s1936_s25 = smov (!%p1251_p0, %s1934_s25), 8 }
 0x322   : > { %v504_v61 = vpop.xlane.xlu1 %503 }
 0x323   : > { %v505_v62 = vsub.f32 %v501_v47, %v504_v61 }
 0x325   : > { %v506_v63 = vmul.f32 1.442695, %v505_v62 }
 0x327   : > { %1342 = vpow2.f32 %v506_v63 }
 0x32a   : > { %v671_v0 = vpop.xlane.xlu0 %670 }
 0x32b   : > { %v672_v1 = vsub.f32 %v668_v51, %v671_v0 }
 0x32d   : > { %v1343_v2 = vpop.eup %1342  ;;  %v673_v3 = vmul.f32 1.442695, %v672_v1 }
 0x32e   : > { %v508_v4 = vsel %vm472_vm5, %v1343_v2, 0.0 }
 0x32f   : > { %1344 = vpow2.f32 %v673_v3  ;;  %509 = vadd.xlane.f32.xlu1 %v508_v4 }
 0x330   : > { %v585_v5 = vpop.xlane.xlu2 %584 }
 0x331   : > { %v586_v6 = vsub.f32 %v582_v56, %v585_v5 }
 0x333   : > { %v587_v7 = vmul.f32 1.442695, %v586_v6 }
 0x335   : > { %v1700_v9 = vpop.eup %1344  ;;  %1346 = vpow2.f32 %v587_v7 }
 0x336   : > { %v675_v10 = vsel %vm472_vm5, %v1700_v9, 0.0 }
 0x337   : > { %676 = vadd.xlane.f32.xlu1 %v675_v10 }
 0x338   : > { %v757_v11 = vpop.xlane.xlu2 %756 }
 0x339   : > { %v758_v12 = vsub.f32 %v754_v59, %v757_v11  ;;  %v905_v59 = vld [vmem:[%s1924_s8] sm:$0xff] }
 0x33b   : > { %v1704_v13 = vpop.eup %1346  ;;  %v759_v14 = vmul.f32 1.442695, %v758_v12 }
 0x33c   : > { %v589_v15 = vsel %vm472_vm5, %v1704_v13, 0.0 }
 0x33d   : > { %1348 = vpow2.f32 %v759_v14  ;;  %590 = vadd.xlane.f32.xlu2 %v589_v15  ;;  %v814_v15 = vld [vmem:[%s1922_s6 + $0x10] sm:$0xff] }
 0x340   : > { %v527_v16 = vpop.permute.xlu2 %526 }
 0x341   : > { %547 = vmatpush.msra.mxu2 %v527_v16  ;;  %v813_v16 = vld [vmem:[%s1922_s6 + $0x8] sm:$0xff] }
 0x343   : > { %v1708_v17 = vpop.eup %1348 }
 0x344   : > { %v761_v18 = vsel %vm472_vm5, %v1708_v17, 0.0 }
 0x345   : > { %762 = vadd.xlane.f32.xlu0 %v761_v18 }
 0x350   : > { %607 = vrot.lane.b32.xlu1 %v1671_v36, %s1501_s22  ;;  %s1263_s22 = sshll.u32 %s1600_s13, 1 }
 0x355   : > { %779 = vrot.lane.b32.xlu2 %v1671_v36, %s1502_s23  ;;  %s1264_s23 = sshll.u32 %s1600_s13, 3 }
 0x356   : > { %s1098_s4 = scalar_lea.hbm %s1902_s11, %s1264_s23 }
 0x359   : > { %693 = vrot.lane.b32.xlu0 %v1671_v36, %s1503_s24  ;;  %s1799_s24 = sand.u32 1, %s1480_s0  }
 0x35a   : > { %s1230_s16 = sshll.u32 %s1799_s24, 1 }
 0x35b   : > { %s1818_s17 = scalar_lea.vmem [#allocation6], %s1230_s16  ;;  %s1084_s16 = scalar_lea.hbm %s1901_s10, %s1263_s22 }
 0x35c   : > { %s1086_s5 = sshll.u32 %s1818_s17, 4  ;;  %s1412_s22 = scalar_lea.hbm %s1901_s10, 4  ;;  %s1087_s5 = int_to_ptr.vmem [resolvable:$true] %s1086_s5 }
 0x3a2   : > { %v510_v19 = vpop.xlane.xlu1 %509 }
 0x3a3   : > { %1350 = vrcp.f32 %v510_v19  ;;  %v522_v24 = vand.u32 2147483648, %v510_v19  ;;  %v520_v27 = vand.u32 2147483647, %v510_v19  ;;  %vm516_vm7 = vweird.f32 %v510_v19 }
 0x3a5   : > { %v523_v30 = vor.u32 1.1754944e-38, %v522_v24  ;;  %vm521_vm9 = vcmp.eq.f32.partialorder %v520_v27, 8.507059e+37 }
 0x3a9   : > { %v1351_v20 = vpop.eup %1350 }
 0x3aa   : > { %v512_v21 = vmul.f32 %v1351_v20, %v510_v19  ;;  %v677_v22 = vpop.xlane.xlu1 %676  ;;  %vm517_vm6 = vweird.f32 %v1351_v20 }
 0x3ab   : > { %1352 = vrcp.f32 %v677_v22  ;;  %vm518_vm8 = vmor %vm516_vm7, %vm517_vm6  ;;  %v689_v53 = vand.u32 2147483648, %v677_v22  ;;  %vm683_vm15 = vweird.f32 %v677_v22  ;;  %v687_v57 = vand.u32 2147483647, %v677_v22 }
 0x3ac   : > { %v513_v23 = vsub.f32 1.0, %v512_v21 }
 0x3ad   : > { %v690_v0 = vor.u32 1.1754944e-38, %v689_v53  ;;  %vm688_vm4 = vcmp.eq.f32.partialorder %v687_v57, 8.507059e+37  ;;  %v911_v53 = vld [vmem:[%s1924_s8 + $0x30] sm:$0xff] }
 0x3ae   : > { %v514_v25 = vmul.f32 %v1351_v20, %v513_v23  ;;  %v907_v57 = vld [vmem:[%s1924_s8 + $0x10] sm:$0xff] }
 0x3b0   : > { %v591_v28 = vpop.xlane.xlu2 %590  ;;  %v515_v29 = vadd.f32 %v1351_v20, %v514_v25 }
 0x3b1   : > { %1354 = vrcp.f32 %v591_v28  ;;  %v1353_v31 = vpop.eup %1352  ;;  %v603_v42 = vand.u32 2147483648, %v591_v28  ;;  %v601_v44 = vand.u32 2147483647, %v591_v28  ;;  %vm597_vm11 = vweird.f32 %v591_v28 }
 0x3b2   : > { %v519_v32 = vsel %vm518_vm8, %v1351_v20, %v515_v29  ;;  %v679_v36 = vmul.f32 %v1353_v31, %v677_v22  ;;  %vm684_vm14 = vweird.f32 %v1353_v31  ;;  %vm723_vm8 = vcmask 195712  }
 0x3b3   : > { %v524_v34 = vsel %vm521_vm9, %v523_v30, %v519_v32  ;;  %v604_v48 = vor.u32 1.1754944e-38, %v603_v42  ;;  %vm602_vm13 = vcmp.eq.f32.partialorder %v601_v44, 8.507059e+37  ;;  %vm1717_vm1 = vmor %vm683_vm15, %vm684_vm14  ;;  %vm809_vm9 = vcmask 261312  }
 0x3b4   : > { %v525_v35 = vmul.f32 %v1343_v2, %v524_v34  ;;  %v680_v40 = vsub.f32 1.0, %v679_v36  ;;  %v816_v22 = vperm.slane %v1660_v26, 2  ;;  %v870_v34 = vld [vmem:[%s1923_s7 + $0x18] sm:$0xff]  ;;  %v867_v36 = vld [vmem:[%s1923_s7] sm:$0xff] }
 0x3b6   : > { %1236 = vmatmul.msk.f32.vlgmr.msra.gmra.mxu2 %vm472_vm5, %v525_v35  ;;  %v681_v45 = vmul.f32 %v1353_v31, %v680_v40  ;;  %v868_v35 = vld [vmem:[%s1923_s7 + $0x8] sm:$0xff] }
 0x3b7   : > { %v1355_v37 = vpop.eup %1354 }
 0x3b8   : > { %v593_v38 = vmul.f32 %v1355_v37, %v591_v28  ;;  %v763_v39 = vpop.xlane.xlu0 %762  ;;  %vm598_vm10 = vweird.f32 %v1355_v37  ;;  %v682_v51 = vadd.f32 %v1353_v31, %v681_v45  ;;  %v780_v62 = vpop.permute.xlu2 %779 }
 0x3b9   : > { %1356 = vrcp.f32 %v763_v39  ;;  %vm599_vm12 = vmor %vm597_vm11, %vm598_vm10  ;;  %v775_v58 = vand.u32 2147483648, %v763_v39  ;;  %v773_v61 = vand.u32 2147483647, %v763_v39  ;;  %vm769_vm3 = vweird.f32 %v763_v39 }
 0x3ba   : > { %v594_v41 = vsub.f32 1.0, %v593_v38  ;;  %v686_v63 = vsel %vm1717_vm1, %v1353_v31, %v682_v51 }
 0x3bb   : > { %v776_v2 = vor.u32 1.1754944e-38, %v775_v58  ;;  %vm774_vm7 = vcmp.eq.f32.partialorder %v773_v61, 8.507059e+37  ;;  %v691_v4 = vsel %vm688_vm4, %v690_v0, %v686_v63  ;;  %v906_v58 = vld [vmem:[%s1924_s8 + $0x8] sm:$0xff] }
 0x3bc   : > { %v595_v43 = vmul.f32 %v1355_v37, %v594_v41  ;;  %v692_v10 = vmul.f32 %v1700_v9, %v691_v4  ;;  %v815_v9 = vld [vmem:[%s1922_s6 + $0x18] sm:$0xff] }
 0x3bd   : > { %832 = vmatpush.msrb.mxu1 %v815_v9 }
 0x3be   : > { %v596_v46 = vadd.f32 %v1355_v37, %v595_v43 }
 0x3bf   : > { %v1357_v47 = vpop.eup %1356  ;;  %833 = vmatpush.msrb.mxu1 %v814_v15 }
 0x3c0   : > { %v765_v49 = vmul.f32 %v1357_v47, %v763_v39  ;;  %v600_v50 = vsel %vm599_vm12, %v1355_v37, %v596_v46  ;;  %vm770_vm2 = vweird.f32 %v1357_v47  ;;  %v863_v46 = vperm.slane %v1660_v26, 3 }
 0x3c1   : > { %v605_v52 = vsel %vm602_vm13, %v604_v48, %v600_v50  ;;  %vm771_vm6 = vmor %vm769_vm3, %vm770_vm2  ;;  %834 = vmatpush.msrb.mxu1 %v813_v16  ;;  %vm914_vm13 = vcmask 523264   ;;  %vm997_vm2 = vcmask 58368   ;;  %vm1039_vm3 = vcmask 58369  }
 0x3c2   : > { %v766_v54 = vsub.f32 1.0, %v765_v49  ;;  %v608_v55 = vpop.permute.xlu1 %607  ;;  %v606_v56 = vmul.f32 %v1704_v13, %v605_v52  ;;  %v865_v49 = vperm.slane %v1660_v26, 4  ;;  %v912_v52 = vld [vmem:[%s1924_s8 + $0x38] sm:$0xff] }
 0x3c3   : > { %628 = vmatpush.msrb.mxu2 %v608_v55  ;;  %926 = vmatpush.msrb.mxu0 %v912_v52  ;;  %v909_v55 = vld [vmem:[%s1924_s8 + $0x20] sm:$0xff] }
 0x3c4   : > { %v767_v60 = vmul.f32 %v1357_v47, %v766_v54  ;;  %1239 = vmatmul.msk.f32.vlgmr.msrb.gmra.mxu2 %vm472_vm5, %v606_v56  ;;  %v910_v54 = vld [vmem:[%s1924_s8 + $0x28] sm:$0xff]  ;;  %v908_v56 = vld [vmem:[%s1924_s8 + $0x18] sm:$0xff] }
 0x3c5   : > { %800 = vmatpush.msra.mxu2 %v780_v62  ;;  %927 = vmatpush.msrb.mxu0 %v911_v53 }
 0x3c6   : > { %v768_v1 = vadd.f32 %v1357_v47, %v767_v60  ;;  %v1337_v60 = vld [vmem:[%s1923_s7 + $0x20] ss:$0 sm:$0xff] }
 0x3c7   : > { %928 = vmatpush.msrb.mxu0 %v910_v54 }
 0x3c8   : > { %v772_v3 = vsel %vm771_vm6, %v1357_v47, %v768_v1  ;;  %vm1032_vm6 = vcmask 57344  }
 0x3c9   : > { %v777_v5 = vsel %vm774_vm7, %v776_v2, %v772_v3  ;;  %929 = vmatpush.msrb.mxu0 %v909_v55 }
 0x3ca   : > { %v778_v6 = vmul.f32 %v1708_v17, %v777_v5  ;;  %v812_v17 = vld [vmem:[%s1922_s6] sm:$0xff]  ;;  %s1088_s6 = sshll.u32 %s1084_s16, 4  ;;  %s1089_s6 = int_to_ptr.hbm [resolvable:$true] %s1088_s6 }
 0x3cb   : > { %v694_v7 = vpop.permute.xlu0 %693  ;;  %835 = vmatpush.msrb.mxu1 %v812_v17  ;;  %930 = vmatpush.msrb.mxu0 %v908_v56  ;;  %s1406_s8 = sshra.s32 %s1089_s6, 4  ;;  %s1407_s8 = int_to_ptr.hbm [resolvable:$true] %s1406_s8 }
 0x3cc   : > { %714 = vmatpush.msrb.mxu3 %v694_v7  ;;  %1245 = vmatmul.msk.f32.vlgmr.msra.gmra.mxu2 %vm472_vm5, %v778_v6  ;;  %p1413_p4 = scmp.lt.s32.totalorder %s1407_s8, %s1901_s10 }
 0x3cd   : > { %1242 = vmatmul.msk.f32.vlgmr.msrb.gmra.mxu3 %vm472_vm5, %v692_v10  ;;  %931 = vmatpush.msrb.mxu0 %v907_v57  ;;  %v913_v10 = vperm.slane %v1660_v26, 5 }
 0x3ce   : > { %888 = vmatpush.msra.mxu3 %v870_v34  ;;  %v963_v34 = vperm.slane %v1660_v26, 7 }
 0x3cf   : > { %932 = vmatpush.msrb.mxu0 %v906_v58 }
 0x3d1   : > { %933 = vmatpush.msrb.mxu0 %v905_v59 }
 0x439   : > { %v549_v11 = vpop.f32.mrf.mxu2 }
 0x43a   : > { %552 = vst.msk [vmem:[#allocation2] sm:$0xff] %vm472_vm5, %v549_v11  ;;  %vm637_vm5 = vcmask 130112  }
 0x447   : > { %v630_v12 = vpop.f32.mrf.mxu2 }
 0x448   : > { %634 = vrot.lane.b32.xlu0 %v630_v12, %s1504_s26  ;;  %s1231_s26 = sshll.u32 %s1799_s24, 3 }
 0x44f   : > { %v802_v13 = vpop.f32.mrf.mxu2 }
 0x450   : > { %v716_v14 = vpop.f32.mrf.mxu3  ;;  %806 = vrot.lane.b32.xlu2 %v802_v13, %s1505_s27  ;;  %s1805_s27 = scalar_lea.vmem [#allocation8], %s1231_s26 }
 0x451   : > { %720 = vrot.lane.b32.xlu1 %v716_v14, %s1506_s28  ;;  %s1004_s28 = sld [smem:[#allocation5 + %s1600_s13]] }
 0x457   : > { %p1005_p11 = scmp.gt.s32.totalorder %s1004_s28, 0  ;;  %p1256_p12 = scmp.lt.s32.totalorder %s1004_s28, 8 }
 0x459   : > { %s1006_s14 = scalar_select %p1005_p11, %s1004_s28, 0 }
 0x45b   : > { %s1932_s14 = smov (!%p1256_p12, %s1006_s14), 8 }
 0x4aa   : > { %v807_v20 = vpop.permute.xlu2 %806 }
 0x4ba   : > { %v635_v18 = vpop.permute.xlu0 %634 }
 0x4bb   : > { %638 = vst.msk [vmem:[#allocation2] sm:$0xff] %vm637_vm5, %v635_v18 }
 0x4c3   : > { %v721_v19 = vpop.permute.xlu1 %720 }
 0x4c4   : > { %724 = vst.msk [vmem:[#allocation2] sm:$0xff] %vm723_vm8, %v721_v19 }
 0x4c5   : > { %810 = vst.msk [vmem:[#allocation2] sm:$0xff] %vm809_vm9, %v807_v20 }
 0x4cc   : > { %v811_v21 = vld [vmem:[#allocation2] sm:$0xff] }
 0x4cd   : > { %1246 = vmatmul.msk.f32.vlgmr.msrb.gmra.mxu1 %vm406_vm0, %v811_v21  ;;  %v966_v21 = vld [vmem:[%s1925_s9] sm:$0x3]  ;;  %s1408_s9 = scalar_lea.hbm %s1407_s8, 2 }
 0x4ce   : > { %p1409_p1 = scmp.ne.s32.totalorder %s1407_s8, %s1408_s9  ;;  %p1414_p7 = scmp.lt.s32.totalorder %s1412_s22, %s1408_s9 }
 0x4d0   : > { %p1410_p2 = pnand %p1409_p1, %p1617_p5  ;;  %p1415_p8 = por %p1414_p7, %p1413_p4 }
 0x4d2   : > { %p1411_p3 = pneg %p1410_p2 }
 0x4d4   : > { %p1416_p9 = pnand %p1415_p8, %p1411_p3 }
 0x54a   : > { %v837_v23 = vpop.f32.mrf.mxu1 }
 0x54b   : > { %v838_v24 = vadd.f32 %v837_v23, %v816_v22  ;;  %v1507_v22 = vmov 32  }
 0x54c   : > { %1333 = vset.pattern.permute.xlu1 %v1507_v22  ;;  %1334 = vset.pattern.permute.xlu0 %v1507_v22 }
 0x54d   : > { %v840_v25 = vadd.f32 %v838_v24, %v1664_v33  ;;  %v869_v33 = vld [vmem:[%s1923_s7 + $0x10] sm:$0xff]  ;;  %s1066_s7 = scalar_lea.sflag [#allocation7], %s1799_s24 }
 0x54e   : > { %889 = vmatpush.msra.mxu3 %v869_v33 }
 0x54f   : > { %v841_v27 = vsel %vm406_vm0, %v840_v25, 0.0 }
 0x550   : > { %842 = vadd.xlane.f32.xlu0 %v841_v27  ;;  %890 = vmatpush.msra.mxu3 %v868_v35 }
 0x552   : > { %891 = vmatpush.msra.mxu3 %v867_v36  ;;  %v1015_v36 = vlaneseq }
 0x5c3   : > { %v843_v28 = vpop.xlane.xlu0 %842 }
 0x5c4   : > { %v844_v29 = vmul.f32 %v843_v28, %v1640_v8 }
 0x5c6   : > { %v845_v30 = vsub.f32 %v840_v25, %v844_v29 }
 0x5c8   : > { %v846_v31 = vmul.f32 %v845_v30, %v845_v30 }
 0x5ca   : > { %v847_v32 = vsel %vm406_vm0, %v846_v31, 0.0 }
 0x5cb   : > { %848 = vadd.xlane.f32.xlu1 %v847_v32 }
 0x5e4   : > { %969 = vperm.xlu1 %1333, %v966_v21  }
 0x63e   : > { %v849_v37 = vpop.xlane.xlu1 %848 }
 0x63f   : > { %v850_v38 = vmul.f32 %v849_v37, %v1640_v8 }
 0x641   : > { %v851_v39 = vadd.f32 1e-12, %v850_v38 }
 0x643   : > { %1358 = vrsqrt.f32 %v851_v39  ;;  %vm858_vm11 = vweird.f32 %v851_v39 }
 0x649   : > { %v1359_v40 = vpop.eup %1358 }
 0x64a   : > { %v853_v41 = vmul.f32 %v1359_v40, %v851_v39  ;;  %vm859_vm10 = vweird.f32 %v1359_v40  ;;  %v1814_v39 = vand.u32 127, %v1015_v36 }
 0x64b   : > { %vm860_vm12 = vmor %vm858_vm11, %vm859_vm10 }
 0x64c   : > { %v854_v42 = vmul.f32 %v1359_v40, %v853_v41 }
 0x64e   : > { %v855_v43 = vmul.f32 0.5, %v854_v42 }
 0x650   : > { %v856_v44 = vsub.f32 1.5, %v855_v43 }
 0x652   : > { %v857_v45 = vmul.f32 %v1359_v40, %v856_v44 }
 0x654   : > { %v861_v47 = vsel %vm860_vm12, %v1359_v40, %v857_v45  ;;  %v1036_v40 = vstv %s1932_s14 }
 0x655   : > { %v862_v48 = vmul.f32 %v861_v47, %v845_v30 }
 0x656   : > { %v970_v37 = vpop.permute.xlu1 %969 }
 0x657   : > { %v864_v50 = vmul.f32 %v863_v46, %v862_v48  ;;  %v1029_v48 = vstv %s1936_s25 }
 0x658   : > { %vm1030_vm4 = vcmp.eq.s32.totalorder %v1814_v39, %v1029_v48 }
 0x659   : > { %v866_v51 = vadd.f32 %v865_v49, %v864_v50 }
 0x65b   : > { %1247 = vmatmul.msk.f32.vlgmr.msra.gmra.mxu3 %vm406_vm0, %v866_v51 }
 0x6de   : > { %v893_v61 = vpop.f32.mrf.mxu3 }
 0x6df   : > { %v894_v62 = vadd.f32 %v1337_v60, %v893_v61 }
 0x6e1   : > { %v896_v63 = vmul.f32 %v894_v62, %v894_v62 }
 0x6e3   : > { %v897_v0 = vmul.f32 %v896_v63, %v894_v62 }
 0x6e5   : > { %v898_v1 = vmul.f32 0.044715, %v897_v0 }
 0x6e7   : > { %v899_v2 = vadd.f32 %v898_v1, %v894_v62 }
 0x6e9   : > { %v900_v3 = vmul.f32 0.7978846, %v899_v2 }
 0x6eb   : > { %1360 = vtanh.f32 %v900_v3 }
 0x6f1   : > { %v1361_v4 = vpop.eup %1360 }
 0x6f2   : > { %v902_v5 = vadd.f32 1.0, %v1361_v4 }
 0x6f4   : > { %v903_v6 = vmul.f32 0.5, %v902_v5 }
 0x6f6   : > { %v904_v7 = vmul.f32 %v903_v6, %v894_v62 }
 0x6f8   : > { %1248 = vmatmul.msk.f32.vlgmr.msrb.gmra.mxu0 %vm914_vm13, %v904_v7 }
 0x775   : > { %v935_v11 = vpop.f32.mrf.mxu0 }
 0x776   : > { %v936_v12 = vadd.f32 %v935_v11, %v913_v10 }
 0x778   : > { %v938_v13 = vadd.f32 %v936_v12, %v866_v51 }
 0x77a   : > { %v939_v14 = vsel %vm406_vm0, %v938_v13, 0.0 }
 0x77b   : > { %940 = vadd.xlane.f32.xlu2 %v939_v14 }
 0x7ee   : > { %v941_v9 = vpop.xlane.xlu2 %940 }
 0x7ef   : > { %v942_v15 = vmul.f32 %v941_v9, %v1640_v8 }
 0x7f1   : > { %v943_v16 = vsub.f32 %v938_v13, %v942_v15 }
 0x7f3   : > { %v944_v17 = vmul.f32 %v943_v16, %v943_v16 }
 0x7f5   : > { %v945_v18 = vsel %vm406_vm0, %v944_v17, 0.0 }
 0x7f6   : > { %946 = vadd.xlane.f32.xlu0 %v945_v18 }
 0x869   : > { %v947_v19 = vpop.xlane.xlu0 %946 }
 0x86a   : > { %v948_v20 = vmul.f32 %v947_v19, %v1640_v8  ;;  %v961_v8 = vperm.slane %v1660_v26, 6 }
 0x86c   : > { %v949_v23 = vadd.f32 1e-12, %v948_v20 }
 0x86e   : > { %1362 = vrsqrt.f32 %v949_v23  ;;  %vm956_vm15 = vweird.f32 %v949_v23 }
 0x874   : > { %v1363_v24 = vpop.eup %1362 }
 0x875   : > { %v951_v25 = vmul.f32 %v1363_v24, %v949_v23  ;;  %vm957_vm14 = vweird.f32 %v1363_v24 }
 0x876   : > { %vm958_vm1 = vmor %vm956_vm15, %vm957_vm14 }
 0x877   : > { %v952_v27 = vmul.f32 %v1363_v24, %v951_v25 }
 0x879   : > { %v953_v28 = vmul.f32 0.5, %v952_v27 }
 0x87b   : > { %v954_v29 = vsub.f32 1.5, %v953_v28 }
 0x87d   : > { %v955_v30 = vmul.f32 %v1363_v24, %v954_v29 }
 0x87f   : > { %v959_v31 = vsel %vm958_vm1, %v1363_v24, %v955_v30 }
 0x880   : > { %v960_v32 = vmul.f32 %v959_v31, %v943_v16 }
 0x882   : > { %v962_v33 = vmul.f32 %v961_v8, %v960_v32 }
 0x884   : > { %v964_v35 = vadd.f32 %v963_v34, %v962_v33 }
 0x886   : > { %1249 = vmatpush.xpose.msk.msrb.mxu2 %vm406_vm0, %v964_v35  ;;  %965 = vst.msk [vmem:[%s1805_s27] sm:$0xff] %vm406_vm0, %v964_v35 }
 0x889   : > { %1250 = vmatmul.msk.f32.vlgmr.msrb.gmra.mxu2 %vm406_vm0, %v966_v21  ;;  %vm1037_vm0 = vcmp.eq.s32.totalorder %v1814_v39, %v1036_v40 }
 0x90c   : > { %v994_v26 = vpop.f32.mrf.mxu2 }
 0x90d   : > { %v995_v38 = vadd.f32 %v994_v26, %v970_v37 }
 0x90f   : > { %v1017_v41 = vsel %vm997_vm2, %v995_v38, -inf  ;;  %998 = vst.msk [vmem:[%s1818_s17] sm:$0x3] %vm997_vm2, %v995_v38  ;;  %v1038_v42 = vsel %vm1037_vm0, %v995_v38, 0.0  ;;  %v1031_v50 = vsel %vm1030_vm4, %v995_v38, 0.0 }
 0x910   : > { %1018 = vmax.xlane.f32.xlu2 %v1017_v41  ;;  %v1040_v43 = vsel %vm1039_vm3, %v1038_v42, 0.0  ;;  %v1033_v51 = vsel %vm1032_vm6, %v1031_v50, 0.0 }
 0x918   : > { %1041 = vadd.xlane.f32.xlu2 %v1040_v43 }
 0x983   : > { %v1824_v44 = vpop.xlane.xlu2 %1018 }
 0x984   : > { %v1020_v45 = vsub.f32 %v995_v38, %v1824_v44 }
 0x986   : > { %v1021_v46 = vmul.f32 1.442695, %v1020_v45 }
 0x988   : > { %1364 = vpow2.f32 %v1021_v46 }
 0x98e   : > { %v1365_v47 = vpop.eup %1364 }
 0x98f   : > { %v1023_v49 = vsel %vm997_vm2, %v1365_v47, 0.0 }
 0x990   : > { %1024 = vadd.xlane.f32.xlu0 %v1023_v49 }
 0x998   : > { %1034 = vadd.xlane.f32.xlu0 %v1033_v51 }
 0x999   : > { %1419 = shalt.err (!%p1416_p9)
}
 0x99a   : > { %1271 = dma.vmem_to_hbm [thread:$0]  (%p1617_p5), %s1087_s5, 32, %s1089_s6, %s1066_s7  }
 0x99b   : > { %s1100_s2 = sshll.u32 %s1805_s27, 4  ;;  %s1102_s3 = sshll.u32 %s1098_s4, 4  ;;  %s1101_s2 = int_to_ptr.vmem [resolvable:$true] %s1100_s2  ;;  %s1103_s3 = int_to_ptr.hbm [resolvable:$true] %s1102_s3 }
 0x99c   : > { %s1071_s18 = scalar_lea.sflag [#allocation9], %s1799_s24  ;;  %s1434_s17 = sshra.s32 %s1103_s3, 4  ;;  %s1435_s17 = int_to_ptr.hbm [resolvable:$true] %s1434_s17 }
 0x99d   : > { %s1436_s23 = scalar_lea.hbm %s1435_s17, 8  ;;  %s1440_s16 = scalar_lea.hbm %s1902_s11, 16 }
 0x99e   : > { %p1437_p10 = scmp.ne.s32.totalorder %s1435_s17, %s1436_s23  ;;  %p1441_p13 = scmp.lt.s32.totalorder %s1435_s17, %s1902_s11 }
 0x99f   : > { %p1442_p0 = scmp.lt.s32.totalorder %s1440_s16, %s1436_s23 }
 0x9a0   : > { %p1438_p11 = pnand %p1437_p10, %p1617_p5 }
 0x9a1   : > { %p1443_p1 = por %p1442_p0, %p1441_p13 }
 0x9a2   : > { %p1439_p12 = pneg %p1438_p11 }
 0x9a4   : > { %p1444_p2 = pnand %p1443_p1, %p1439_p12 }
 0x9a6   : > { %1447 = shalt.err (!%p1444_p2)
}
 0x9a7   : > { %1272 = dma.vmem_to_hbm [thread:$0]  (%p1617_p5), %s1101_s2, 128, %s1103_s3, %s1071_s18   ;;  %v1042_v56 = vpop.xlane.xlu2 %1041  ;;  %vm1051_vm7 = vcmp.eq.s32.totalorder %v1814_v39, 1  ;;  %vm1049_vm5 = vcmp.eq.s32.totalorder %v1814_v39, 0  ;;  %vm1057_vm8 = vcmp.eq.s32.totalorder %v1814_v39, 2  ;;  %vm1060_vm9 = vcmp.eq.s32.totalorder %v1814_v39, 3 }
 0x9a8   : > { %p1012_p3 = scmp.ne.s32.totalorder %s1932_s14, 8  ;;  %p1009_p4 = scmp.ne.s32.totalorder %s1936_s25, 8  ;;  %vm1063_vm10 = vcmask 24576  }
 0x9a9   : > { %s402_s27 = scalar_lea.vmem %s1903_s12, %s1629_s21 }
 0x9aa   : > { %s1013_s4 = scalar_select %p1012_p3, 1, 0 }
 0x9ab   : > { %s1010_s5 = scalar_select %p1009_p4, 1, 0 }
 0x9ac   : > { %s1014_s7 = scvt.s32.f32 %s1013_s4 }
 0x9ad   : > { %s1011_s6 = scvt.s32.f32 %s1010_s5 }
 0x9ae   : > { %v1047_v58 = vstv %s1014_s7 }
 0x9af   : > { %v1044_v57 = vstv %s1011_s6  ;;  %v1061_v5 = vsel %vm1060_vm9, %v1047_v58, 0.0 }
 0x9b0   : > { %v1058_v2 = vsel %vm1057_vm8, %v1044_v57, 0.0 }
 0xa03   : > { %v1025_v52 = vpop.xlane.xlu0 %1024 }
 0xa04   : > { %1366 = vlog2.f32 %v1025_v52 }
 0xa0a   : > { %v1367_v53 = vpop.eup %1366 }
 0xa0b   : > { %v1027_v54 = vmul.f32 0.6931472, %v1367_v53  ;;  %v1035_v59 = vpop.xlane.xlu0 %1034 }
 0xa0d   : > { %v1028_v55 = vadd.f32 %v1027_v54, %v1824_v44 }
 0xa0f   : > { %v1043_v60 = vsub.f32 %v1028_v55, %v1035_v59  ;;  %v1046_v61 = vsub.f32 %v1028_v55, %v1042_v56 }
 0xa11   : > { %v1045_v62 = vmul.f32 %v1044_v57, %v1043_v60  ;;  %v1048_v63 = vmul.f32 %v1047_v58, %v1046_v61 }
 0xa13   : > { %v1052_v0 = vsel %vm1051_vm7, %v1048_v63, 0.0  ;;  %v1050_v3 = vsel %vm1049_vm5, %v1045_v62, 0.0 }
 0xa14   : > { %v1054_v1 = vrot.slane %v1052_v0, 1 }
 0xa16   : > { %v1056_v4 = vadd.f32 %v1054_v1, %v1050_v3 }
 0xa18   : > { %v1059_v6 = vadd.f32 %v1058_v2, %v1056_v4 }
 0xa1a   : > { %v1062_v7 = vadd.f32 %v1061_v5, %v1059_v6 }
 0xa1c   : > { %1064 = vst.msk [vmem:[%s402_s27] sm:$0x1] %vm1063_vm10, %v1062_v7 }
 0xa1d PF: > { %p1282_p5 = scmp.ge.s32.totalorder %s1488_s1, 2  ;;  %s1117_s14 = sand.u32 1, %s1476_s29  }
 0xa1e   : > { %s1118_s25 = scalar_lea.sflag [#allocation7], %s1117_s14 }
 0xa1f   : > { %p1276_p7 = pnand %p1282_p5, %p1621_p6 }
 0xa21   : > { %p1277_p8 = pneg %p1276_p7 }
 0xa23   : > { %1467 = dma.done.wait (%p1277_p8), %s1118_s25, 32  }
 0xa24   : > { %1469 = vsyncadd (%p1277_p8), %s1118_s25, 4294967264  ;;  %s1128_s26 = scalar_lea.sflag [#allocation9], %s1117_s14 }
 0xa25   : > { %1471 = dma.done.wait (%p1277_p8), %s1128_s26, 128  }
 0xa26   : > { %1473 = vsyncadd (%p1277_p8), %s1128_s26, 4294967168  ;;  %s1926_s21 = sld [smem:[#allocation13_spill]]  ;;  %p39_p9 = scmp.ge.s32.totalorder %s1604_s15, 4  }
 0xa27   : > { %s1927_s29 = smov %s1480_s0  ;;  %s1928_s0 = smov %s1484_s30 }
 0xa28   : > { %s1930_s1 = smov %s1604_s15  ;;  %41 = sbr.rel (!%p39_p9) target bundleno = 19 (0x13), region = 119 }
 0xa2c   : > { %s1929_s30 = smov %s1926_s21 }
 0xa2d   :  { %1140 = vsyncpa [#allocation7], 1 }
 0xa2e   :  { %1142 = vsyncpa [#allocation7 + $0x1], 1 }
 0xa2f   :  { %1143 = vsyncpa [#allocation9], 1 }
 0xa30   :  { %1145 = vsyncpa [#allocation9 + $0x1], 1 }

</bundles_post_ra>
